<compile_context>
chip_gen: v7x
topology: tpu7x:2x2x1
jax: 0.10.0
libtpu: 0.0.40
codegen_flags: <defaults>
</compile_context>

<pallas_src>
import functools

import jax
import jax.numpy as jnp
from jax.experimental import pallas as pl
from jax.experimental.pallas import tpu as pltpu

_LANE = 128
_VMEM_LIMIT = 48 * 1024 * 1024  # portable budget: fits v7x's 64 MiB VMEM


def _round_up(x, m):
    return (x + m - 1) // m * m


def _pick_tiles(n):
    """Aggregate tiles (tm rows, tk reduction) and padded node count."""
    n_pad128 = _round_up(n, _LANE)
    tm = min(512, n_pad128)                 # don't blow up tiny graphs
    n_pad = _round_up(n_pad128, tm)
    tk = min(2048, n_pad)                   # >=1 MiB int8 A tile per step
    while n_pad % tk:
        tk -= _LANE
    return tm, tk, n_pad


def _pick_proj_tile(n_pad):
    t = min(2048, n_pad)
    while n_pad % t:
        t -= _LANE
    return t


# ---------------------------------------------------------------------------
# Kernels
# ---------------------------------------------------------------------------
def _project_kernel(x_ref, wl_ref, wr_ref, b_ref, p_ref, r_ref):
    """P = X @ W_l (bf16) and hoisted root term R = X @ W_r + b (f32)."""
    x = x_ref[...].astype(jnp.bfloat16)
    wl = wl_ref[...].astype(jnp.bfloat16)
    wr = wr_ref[...].astype(jnp.bfloat16)
    p_ref[...] = jnp.dot(x, wl, preferred_element_type=jnp.float32
                         ).astype(p_ref.dtype)
    r_ref[...] = (jnp.dot(x, wr, preferred_element_type=jnp.float32)
                  + b_ref[...]).astype(r_ref.dtype)


def _sage_aggregate_kernel(a_ref, p_ref, r_ref, dinv_ref, o_ref, *scratch,
                           relu, tk):
    """acc[i] += A_count[i,k] @ P[k]; out = acc * deg_inv + R (opt. relu)."""
    # Accumulate directly into the f32 output block when no scratch is given.
    acc_ref = scratch[0] if scratch else o_ref
    k = pl.program_id(1)

    @pl.when(k == 0)
    def _():
        acc_ref[...] = jnp.zeros_like(acc_ref)

    # int8 edge counts -> bf16 on the VPU (kernel is HBM-bound; VALU is free),
    # then bf16 x bf16 MXU matmul with f32 accumulation.
    a = a_ref[...].astype(jnp.bfloat16)
    p = p_ref[pl.ds(pl.multiple_of(k * tk, tk), tk), :]   # P is VMEM-resident
    acc_ref[...] += jnp.dot(a, p, preferred_element_type=jnp.float32)

    @pl.when(k == pl.num_programs(1) - 1)
    def _():
        out = acc_ref[...] * dinv_ref[...] + r_ref[...]
        if relu:
            out = jnp.maximum(out, 0.0)
        o_ref[...] = out.astype(o_ref.dtype)


# ---------------------------------------------------------------------------
# Layer wrappers
# ---------------------------------------------------------------------------
def _project(x, w_l, w_r, b, *, tm):
    n_pad, f_in_p = x.shape
    f_out_p = w_l.shape[1]
    return pl.pallas_call(
        _project_kernel,
        out_shape=(jax.ShapeDtypeStruct((n_pad, f_out_p), jnp.bfloat16),
                   jax.ShapeDtypeStruct((n_pad, f_out_p), jnp.float32)),
        grid=(n_pad // tm,),
        in_specs=[
            pl.BlockSpec((tm, f_in_p), lambda i: (i, 0)),
            pl.BlockSpec((f_in_p, f_out_p), lambda i: (0, 0)),
            pl.BlockSpec((f_in_p, f_out_p), lambda i: (0, 0)),
            pl.BlockSpec((1, f_out_p), lambda i: (0, 0)),
        ],
        out_specs=(pl.BlockSpec((tm, f_out_p), lambda i: (i, 0)),
                   pl.BlockSpec((tm, f_out_p), lambda i: (i, 0))),
        compiler_params=pltpu.CompilerParams(
            dimension_semantics=("parallel",),
            vmem_limit_bytes=_VMEM_LIMIT),
    )(x, w_l, w_r, b)


def sage_conv(a_i8, deg_inv, x, w_l, w_r, b, *, relu, out_dtype, tm, tk,
              tm_proj):
    """One SAGEConv layer: project-then-aggregate, tiled over (rows, K).

    a_i8   : [N_pad, N_pad] int8 unnormalized edge counts A[dst, src]
    deg_inv: [N_pad, 1]     f32 exact 1/deg(dst)
    x      : [N_pad, F_in_pad] f32 or bf16
    w_l/w_r: [F_in_pad, F_out_pad] f32 (zero-padded)
    b      : [1, F_out_pad] f32 (zero-padded)
    """
    n_pad = a_i8.shape[0]
    f_out_p = w_l.shape[1]

    p, r = _project(x, w_l, w_r, b, tm=tm_proj)   # P bf16, R f32

    use_scratch = out_dtype != jnp.float32        # acc in o_ref when f32 out
    scratch = ([pltpu.VMEM((tm, f_out_p), jnp.float32)] if use_scratch else [])
    out_itemsize = 2 if use_scratch else 4

    grid = (n_pad // tm, n_pad // tk)
    cost = pl.CostEstimate(
        flops=2 * n_pad * n_pad * f_out_p,
        transcendentals=0,
        bytes_accessed=(a_i8.size + p.size * 2 + r.size * 4 + deg_inv.size * 4
                        + n_pad * f_out_p * out_itemsize),
    )
    kernel = functools.partial(_sage_aggregate_kernel, relu=relu, tk=tk)
    return pl.pallas_call(
        kernel,
        out_shape=jax.ShapeDtypeStruct((n_pad, f_out_p), out_dtype),
        grid=grid,
        in_specs=[
            pl.BlockSpec((tm, tk), lambda i, k: (i, k)),            # A counts
            pl.BlockSpec((n_pad, f_out_p), lambda i, k: (0, 0)),    # P resident
            pl.BlockSpec((tm, f_out_p), lambda i, k: (i, 0)),       # root term
            pl.BlockSpec((tm, 1), lambda i, k: (i, 0)),             # 1/deg
        ],
        out_specs=pl.BlockSpec((tm, f_out_p), lambda i, k: (i, 0)),
        scratch_shapes=scratch,
        compiler_params=pltpu.CompilerParams(
            dimension_semantics=("parallel", "arbitrary"),
            vmem_limit_bytes=_VMEM_LIMIT),
        cost_estimate=cost,
    )(a_i8, p, r, deg_inv)


# ---------------------------------------------------------------------------
# Forward pass (glue in plain JAX: adjacency build + padding)
# ---------------------------------------------------------------------------
def build_adjacency(edge_index, n_pad):
    """A[dst, src] = edge count (int8), deg_inv[dst] = 1/deg (exact f32)."""
    src, dst = edge_index[0], edge_index[1]
    counts = jnp.zeros((n_pad, n_pad), jnp.float32).at[dst, src].add(1.0)
    deg = jnp.sum(counts, axis=1, keepdims=True)
    deg_inv = 1.0 / jnp.maximum(deg, 1.0)
    return counts.astype(jnp.int8), deg_inv.astype(jnp.float32)


def gnn_forward(x, edge_index, params):
    n, f_in = x.shape
    hidden = params["w_l1"].shape[1]
    f_out = params["w_l2"].shape[1]

    # Lane-dense padding of every feature dim; pad the node axis to the tiles.
    f_in_p = _round_up(f_in, _LANE)
    hid_p = _round_up(hidden, _LANE)
    f_out_p = _round_up(f_out, _LANE)

    tm, tk, n_pad = _pick_tiles(n)
    tm_proj = _pick_proj_tile(n_pad)

    a_i8, deg_inv = build_adjacency(edge_index, n_pad)
    x_p = jnp.pad(x.astype(jnp.float32), ((0, n_pad - n), (0, f_in_p - f_in)))

    def pad_w(w, r, c):
        return jnp.pad(w, ((0, r - w.shape[0]), (0, c - w.shape[1])))

    w_l1 = pad_w(params["w_l1"], f_in_p, hid_p)
    w_r1 = pad_w(params["w_r1"], f_in_p, hid_p)
    b_1 = pad_w(params["b_l1"], 1, hid_p)
    w_l2 = pad_w(params["w_l2"], hid_p, f_out_p)
    w_r2 = pad_w(params["w_r2"], hid_p, f_out_p)
    b_2 = pad_w(params["b_l2"], 1, f_out_p)

    # Layer 1: relu, hidden activation kept bf16 (halves intermediate traffic).
    h = sage_conv(a_i8, deg_inv, x_p, w_l1, w_r1, b_1, relu=True,
                  out_dtype=jnp.bfloat16, tm=tm, tk=tk, tm_proj=tm_proj)
    # Layer 2: final output in f32.
    out = sage_conv(a_i8, deg_inv, h, w_l2, w_r2, b_2, relu=False,
                    out_dtype=jnp.float32, tm=tm, tk=tk, tm_proj=tm_proj)
    return out[:n, :f_out]


# ---------------------------------------------------------------------------
# Params + pure-JAX reference
# ---------------------------------------------------------------------------
def init_params(key, f_in, hidden, f_out):
    ks = jax.random.split(key, 6)
    s1 = 1.0 / jnp.sqrt(f_in)
    s2 = 1.0 / jnp.sqrt(hidden)
    return {
        "w_l1": jax.random.uniform(ks[0], (f_in, hidden), jnp.float32, -s1, s1),
        "w_r1": jax.random.uniform(ks[1], (f_in, hidden), jnp.float32, -s1, s1),
        "b_l1": jax.random.uniform(ks[2], (1, hidden), jnp.float32, -s1, s1),
        "w_l2": jax.random.uniform(ks[3], (hidden, f_out), jnp.float32, -s2, s2),
        "w_r2": jax.random.uniform(ks[4], (hidden, f_out), jnp.float32, -s2, s2),
        "b_l2": jax.random.uniform(ks[5], (1, f_out), jnp.float32, -s2, s2),
    }


def reference_forward(x, edge_index, params):
    """Pure-JAX scatter-mean SAGEConv reference (f32)."""
    n = x.shape[0]

    def layer(x_in, w_l, w_r, b_l):
        src, dst = edge_index[0], edge_index[1]
        summed = jnp.zeros((n, x_in.shape[1]), jnp.float32).at[dst].add(x_in[src])
        deg = jnp.zeros((n,), jnp.float32).at[dst].add(1.0)
        agg = summed / jnp.maximum(deg, 1.0)[:, None]
        return agg @ w_l + x_in @ w_r + b_l

    h = jnp.maximum(layer(x, params["w_l1"], params["w_r1"], params["b_l1"]), 0.0)
    return layer(h, params["w_l2"], params["w_r2"], params["b_l2"])


if __name__ == "__main__":
    key = jax.random.PRNGKey(0)
    k_x, k_e, k_p = jax.random.split(key, 3)

    num_nodes = 64
    num_edges = 256
    f_in, hidden, f_out = 32, 32, 16

    x = jax.random.normal(k_x, (num_nodes, f_in), jnp.float32)
    edge_index = jax.random.randint(k_e, (2, num_edges), 0, num_nodes,
                                    dtype=jnp.int32)
    params = init_params(k_p, f_in, hidden, f_out)

    fwd = jax.jit(gnn_forward)
    out = jax.block_until_ready(fwd(x, edge_index, params))
    ref = jax.block_until_ready(reference_forward(x, edge_index, params))

    assert out.shape == (num_nodes, f_out)
    max_err = float(jnp.max(jnp.abs(out - ref)))
    assert jnp.allclose(out, ref, atol=5e-2, rtol=5e-2), f"max abs err={max_err}"
    print("KERNEL_OK")
</pallas_src>

<mosaic_0001>
module attributes {stable_mosaic.version = 11 : i64} {
  func.func private @main(%arg0: i32) attributes {dimension_semantics = [#tpu.dimension_semantics<core_parallel>], iteration_bounds = array<i64: 2>, tpu.core_type = #tpu.core_type<sc_scalar_subcore>, window_params = []} {
    return
  }
}

module attributes {stable_mosaic.version = 11 : i64} {
  func.func private @main(%arg0: i32) attributes {dimension_semantics = [#tpu.dimension_semantics<core_parallel>], iteration_bounds = array<i64: 2>, tpu.core_type = #tpu.core_type<sc_scalar_subcore>, window_params = []} {
    return
  }
}

module attributes {stable_mosaic.version = 11 : i64} {
  func.func @_project_kernel(%arg0: i32, %arg1: memref<128x128xf32, #tpu.memory_space<vmem>>, %arg2: memref<128x128xf32, #tpu.memory_space<vmem>>, %arg3: memref<128x128xf32, #tpu.memory_space<vmem>>, %arg4: memref<1x128xf32, #tpu.memory_space<vmem>>, %arg5: memref<128x128xbf16, #tpu.memory_space<vmem>>, %arg6: memref<128x128xf32, #tpu.memory_space<vmem>>) attributes {dimension_semantics = [#tpu.dimension_semantics<parallel>], iteration_bounds = array<i64: 1>, scalar_prefetch = 0 : i64, scratch_operands = 0 : i64, tpu.core_type = #tpu.core_type<tc>, window_params = [{transform_indices = @transform_0, window_bounds = array<i64: 128, 128>}, {pipeline_mode = #tpu.pipeline_mode<synchronous>, transform_indices = @transform_1, window_bounds = array<i64: 128, 128>}, {pipeline_mode = #tpu.pipeline_mode<synchronous>, transform_indices = @transform_2, window_bounds = array<i64: 128, 128>}, {pipeline_mode = #tpu.pipeline_mode<synchronous>, transform_indices = @transform_3, window_bounds = array<i64: 1, 128>}, {transform_indices = @transform_4, window_bounds = array<i64: 128, 128>}, {transform_indices = @transform_5, window_bounds = array<i64: 128, 128>}]} {
    %c0 = arith.constant 0 : index
    %c0_0 = arith.constant 0 : index
    %0 = vector.load %arg1[%c0, %c0_0] : memref<128x128xf32, #tpu.memory_space<vmem>>, vector<128x128xf32>
    %1 = arith.truncf %0 : vector<128x128xf32> to vector<128x128xbf16>
    %c0_1 = arith.constant 0 : index
    %c0_2 = arith.constant 0 : index
    %2 = vector.load %arg2[%c0_1, %c0_2] : memref<128x128xf32, #tpu.memory_space<vmem>>, vector<128x128xf32>
    %3 = arith.truncf %2 : vector<128x128xf32> to vector<128x128xbf16>
    %c0_3 = arith.constant 0 : index
    %c0_4 = arith.constant 0 : index
    %4 = vector.load %arg3[%c0_3, %c0_4] : memref<128x128xf32, #tpu.memory_space<vmem>>, vector<128x128xf32>
    %5 = arith.truncf %4 : vector<128x128xf32> to vector<128x128xbf16>
    %cst = arith.constant dense<0.000000e+00> : vector<128x128xf32>
    %6 = tpu.matmul %1, %3, %cst {dimension_numbers = #tpu.dot_dimension_numbers<[1], [0], [0], [1], [0, 0, 1, 1], [], []>} : vector<128x128xbf16>, vector<128x128xbf16>, vector<128x128xf32> -> vector<128x128xf32>
    %7 = arith.truncf %6 : vector<128x128xf32> to vector<128x128xbf16>
    %c0_5 = arith.constant 0 : index
    %c0_6 = arith.constant 0 : index
    %8 = vector.load %arg5[%c0_5, %c0_6] : memref<128x128xbf16, #tpu.memory_space<vmem>>, vector<128x128xbf16>
    tpu.vector_store %arg5[%c0_5, %c0_6], %7 {strides = array<i32>} : memref<128x128xbf16, #tpu.memory_space<vmem>>, vector<128x128xbf16>,
    %cst_7 = arith.constant dense<0.000000e+00> : vector<128x128xf32>
    %9 = tpu.matmul %1, %5, %cst_7 {dimension_numbers = #tpu.dot_dimension_numbers<[1], [0], [0], [1], [0, 0, 1, 1], [], []>} : vector<128x128xbf16>, vector<128x128xbf16>, vector<128x128xf32> -> vector<128x128xf32>
    %c0_8 = arith.constant 0 : index
    %c0_9 = arith.constant 0 : index
    %10 = vector.load %arg4[%c0_8, %c0_9] : memref<1x128xf32, #tpu.memory_space<vmem>>, vector<1x128xf32>
    %11 = vector.broadcast %10 : vector<1x128xf32> to vector<128x128xf32>
    %12 = arith.addf %9, %11 : vector<128x128xf32>
    %c0_10 = arith.constant 0 : index
    %c0_11 = arith.constant 0 : index
    %13 = vector.load %arg6[%c0_10, %c0_11] : memref<128x128xf32, #tpu.memory_space<vmem>>, vector<128x128xf32>
    tpu.vector_store %arg6[%c0_10, %c0_11], %12 {strides = array<i32>} : memref<128x128xf32, #tpu.memory_space<vmem>>, vector<128x128xf32>,
    return
  }
  func.func @transform_0(%arg0: i32) -> (i32, i32) {
    %c0_i32 = arith.constant 0 : i32
    %c0_i32_0 = arith.constant 0 : i32
    return %arg0, %c0_i32 : i32, i32
  }
  func.func @transform_1(%arg0: i32) -> (i32, i32) {
    %c0_i32 = arith.constant 0 : i32
    %c0_i32_0 = arith.constant 0 : i32
    %c0_i32_1 = arith.constant 0 : i32
    return %c0_i32, %c0_i32_0 : i32, i32
  }
  func.func @transform_2(%arg0: i32) -> (i32, i32) {
    %c0_i32 = arith.constant 0 : i32
    %c0_i32_0 = arith.constant 0 : i32
    %c0_i32_1 = arith.constant 0 : i32
    return %c0_i32, %c0_i32_0 : i32, i32
  }
  func.func @transform_3(%arg0: i32) -> (i32, i32) {
    %c0_i32 = arith.constant 0 : i32
    %c0_i32_0 = arith.constant 0 : i32
    %c0_i32_1 = arith.constant 0 : i32
    return %c0_i32, %c0_i32_0 : i32, i32
  }
  func.func @transform_4(%arg0: i32) -> (i32, i32) {
    %c0_i32 = arith.constant 0 : i32
    %c0_i32_0 = arith.constant 0 : i32
    return %arg0, %c0_i32 : i32, i32
  }
  func.func @transform_5(%arg0: i32) -> (i32, i32) {
    %c0_i32 = arith.constant 0 : i32
    %c0_i32_0 = arith.constant 0 : i32
    return %arg0, %c0_i32 : i32, i32
  }
}

module attributes {stable_mosaic.version = 11 : i64} {
  func.func @_sage_aggregate_kernel(%arg0: i32, %arg1: i32, %arg2: memref<128x128xi8, #tpu.memory_space<vmem>>, %arg3: memref<128x128xbf16, #tpu.memory_space<vmem>>, %arg4: memref<128x128xf32, #tpu.memory_space<vmem>>, %arg5: memref<128x1xf32, #tpu.memory_space<vmem>>, %arg6: memref<128x128xbf16, #tpu.memory_space<vmem>>, %arg7: memref<128x128xf32, #tpu.memory_space<vmem>>) attributes {dimension_semantics = [#tpu.dimension_semantics<parallel>, #tpu.dimension_semantics<arbitrary>], iteration_bounds = array<i64: 1, 1>, scalar_prefetch = 0 : i64, scratch_operands = 1 : i64, tpu.core_type = #tpu.core_type<tc>, window_params = [{transform_indices = @transform_0, window_bounds = array<i64: 128, 128>}, {pipeline_mode = #tpu.pipeline_mode<synchronous>, transform_indices = @transform_1, window_bounds = array<i64: 128, 128>}, {transform_indices = @transform_2, window_bounds = array<i64: 128, 128>}, {transform_indices = @transform_3, window_bounds = array<i64: 128, 1>}, {transform_indices = @transform_4, window_bounds = array<i64: 128, 128>}]} {
    %c0_i32 = arith.constant 0 : i32
    %0 = arith.cmpi eq, %arg1, %c0_i32 : i32
    %1 = arith.extui %0 : i1 to i32
    %c0_i32_0 = arith.constant 0 : i32
    %2 = arith.cmpi ne, %1, %c0_i32_0 : i32
    scf.if %2 {
      %cst_9 = arith.constant 0.000000e+00 : f32
      %16 = vector.broadcast %cst_9 : f32 to vector<128x128xf32>
      %c0_10 = arith.constant 0 : index
      %c0_11 = arith.constant 0 : index
      %17 = vector.load %arg7[%c0_10, %c0_11] : memref<128x128xf32, #tpu.memory_space<vmem>>, vector<128x128xf32>
      tpu.vector_store %arg7[%c0_10, %c0_11], %16 {strides = array<i32>} : memref<128x128xf32, #tpu.memory_space<vmem>>, vector<128x128xf32>,
    } else {
    }
    %c0 = arith.constant 0 : index
    %c0_1 = arith.constant 0 : index
    %3 = vector.load %arg2[%c0, %c0_1] : memref<128x128xi8, #tpu.memory_space<vmem>>, vector<128x128xi8>
    %4 = arith.sitofp %3 : vector<128x128xi8> to vector<128x128xbf16>
    %c128_i32 = arith.constant 128 : i32
    %5 = arith.muli %arg1, %c128_i32 : i32
    %6 = tpu.assume_multiple %5, 128 : i32
    %7 = arith.index_cast %6 : i32 to index
    %c0_2 = arith.constant 0 : index
    %8 = vector.load %arg3[%7, %c0_2] : memref<128x128xbf16, #tpu.memory_space<vmem>>, vector<128x128xbf16>
    %c0_3 = arith.constant 0 : index
    %c0_4 = arith.constant 0 : index
    %9 = vector.load %arg7[%c0_3, %c0_4] : memref<128x128xf32, #tpu.memory_space<vmem>>, vector<128x128xf32>
    %cst = arith.constant dense<0.000000e+00> : vector<128x128xf32>
    %10 = tpu.matmul %4, %8, %cst {dimension_numbers = #tpu.dot_dimension_numbers<[1], [0], [0], [1], [0, 0, 1, 1], [], []>} : vector<128x128xbf16>, vector<128x128xbf16>, vector<128x128xf32> -> vector<128x128xf32>
    %11 = arith.addf %9, %10 : vector<128x128xf32>
    %c0_5 = arith.constant 0 : index
    %c0_6 = arith.constant 0 : index
    %12 = vector.load %arg7[%c0_5, %c0_6] : memref<128x128xf32, #tpu.memory_space<vmem>>, vector<128x128xf32>
    tpu.vector_store %arg7[%c0_5, %c0_6], %11 {strides = array<i32>} : memref<128x128xf32, #tpu.memory_space<vmem>>, vector<128x128xf32>,
    %c0_i32_7 = arith.constant 0 : i32
    %13 = arith.cmpi eq, %arg1, %c0_i32_7 : i32
    %14 = arith.extui %13 : i1 to i32
    %c0_i32_8 = arith.constant 0 : i32
    %15 = arith.cmpi ne, %14, %c0_i32_8 : i32
    scf.if %15 {
      %c0_9 = arith.constant 0 : index
      %c0_10 = arith.constant 0 : index
      %16 = vector.load %arg7[%c0_9, %c0_10] : memref<128x128xf32, #tpu.memory_space<vmem>>, vector<128x128xf32>
      %c0_11 = arith.constant 0 : index
      %c0_12 = arith.constant 0 : index
      %17 = vector.load %arg5[%c0_11, %c0_12] : memref<128x1xf32, #tpu.memory_space<vmem>>, vector<128x1xf32>
      %18 = vector.broadcast %17 : vector<128x1xf32> to vector<128x128xf32>
      %19 = arith.mulf %16, %18 : vector<128x128xf32>
      %c0_13 = arith.constant 0 : index
      %c0_14 = arith.constant 0 : index
      %20 = vector.load %arg4[%c0_13, %c0_14] : memref<128x128xf32, #tpu.memory_space<vmem>>, vector<128x128xf32>
      %21 = arith.addf %19, %20 : vector<128x128xf32>
      %cst_15 = arith.constant 0.000000e+00 : f32
      %22 = vector.broadcast %cst_15 : f32 to vector<128x128xf32>
      %23 = arith.maximumf %21, %22 : vector<128x128xf32>
      %24 = arith.truncf %23 : vector<128x128xf32> to vector<128x128xbf16>
      %c0_16 = arith.constant 0 : index
      %c0_17 = arith.constant 0 : index
      %25 = vector.load %arg6[%c0_16, %c0_17] : memref<128x128xbf16, #tpu.memory_space<vmem>>, vector<128x128xbf16>
      tpu.vector_store %arg6[%c0_16, %c0_17], %24 {strides = array<i32>} : memref<128x128xbf16, #tpu.memory_space<vmem>>, vector<128x128xbf16>,
    } else {
    }
    return
  }
  func.func @transform_0(%arg0: i32, %arg1: i32) -> (i32, i32) {
    %c0_i32 = arith.constant 0 : i32
    return %arg0, %arg1 : i32, i32
  }
  func.func @transform_1(%arg0: i32, %arg1: i32) -> (i32, i32) {
    %c0_i32 = arith.constant 0 : i32
    %c0_i32_0 = arith.constant 0 : i32
    %c0_i32_1 = arith.constant 0 : i32
    return %c0_i32, %c0_i32_0 : i32, i32
  }
  func.func @transform_2(%arg0: i32, %arg1: i32) -> (i32, i32) {
    %c0_i32 = arith.constant 0 : i32
    %c0_i32_0 = arith.constant 0 : i32
    return %arg0, %c0_i32 : i32, i32
  }
  func.func @transform_3(%arg0: i32, %arg1: i32) -> (i32, i32) {
    %c0_i32 = arith.constant 0 : i32
    %c0_i32_0 = arith.constant 0 : i32
    return %arg0, %c0_i32 : i32, i32
  }
  func.func @transform_4(%arg0: i32, %arg1: i32) -> (i32, i32) {
    %c0_i32 = arith.constant 0 : i32
    %c0_i32_0 = arith.constant 0 : i32
    return %arg0, %c0_i32 : i32, i32
  }
}

module attributes {stable_mosaic.version = 11 : i64} {
  func.func @_project_kernel(%arg0: i32, %arg1: memref<128x128xbf16, #tpu.memory_space<vmem>>, %arg2: memref<128x128xf32, #tpu.memory_space<vmem>>, %arg3: memref<128x128xf32, #tpu.memory_space<vmem>>, %arg4: memref<1x128xf32, #tpu.memory_space<vmem>>, %arg5: memref<128x128xbf16, #tpu.memory_space<vmem>>, %arg6: memref<128x128xf32, #tpu.memory_space<vmem>>) attributes {dimension_semantics = [#tpu.dimension_semantics<parallel>], iteration_bounds = array<i64: 1>, scalar_prefetch = 0 : i64, scratch_operands = 0 : i64, tpu.core_type = #tpu.core_type<tc>, window_params = [{transform_indices = @transform_0, window_bounds = array<i64: 128, 128>}, {pipeline_mode = #tpu.pipeline_mode<synchronous>, transform_indices = @transform_1, window_bounds = array<i64: 128, 128>}, {pipeline_mode = #tpu.pipeline_mode<synchronous>, transform_indices = @transform_2, window_bounds = array<i64: 128, 128>}, {pipeline_mode = #tpu.pipeline_mode<synchronous>, transform_indices = @transform_3, window_bounds = array<i64: 1, 128>}, {transform_indices = @transform_4, window_bounds = array<i64: 128, 128>}, {transform_indices = @transform_5, window_bounds = array<i64: 128, 128>}]} {
    %c0 = arith.constant 0 : index
    %c0_0 = arith.constant 0 : index
    %0 = vector.load %arg1[%c0, %c0_0] : memref<128x128xbf16, #tpu.memory_space<vmem>>, vector<128x128xbf16>
    %c0_1 = arith.constant 0 : index
    %c0_2 = arith.constant 0 : index
    %1 = vector.load %arg2[%c0_1, %c0_2] : memref<128x128xf32, #tpu.memory_space<vmem>>, vector<128x128xf32>
    %2 = arith.truncf %1 : vector<128x128xf32> to vector<128x128xbf16>
    %c0_3 = arith.constant 0 : index
    %c0_4 = arith.constant 0 : index
    %3 = vector.load %arg3[%c0_3, %c0_4] : memref<128x128xf32, #tpu.memory_space<vmem>>, vector<128x128xf32>
    %4 = arith.truncf %3 : vector<128x128xf32> to vector<128x128xbf16>
    %cst = arith.constant dense<0.000000e+00> : vector<128x128xf32>
    %5 = tpu.matmul %0, %2, %cst {dimension_numbers = #tpu.dot_dimension_numbers<[1], [0], [0], [1], [0, 0, 1, 1], [], []>} : vector<128x128xbf16>, vector<128x128xbf16>, vector<128x128xf32> -> vector<128x128xf32>
    %6 = arith.truncf %5 : vector<128x128xf32> to vector<128x128xbf16>
    %c0_5 = arith.constant 0 : index
    %c0_6 = arith.constant 0 : index
    %7 = vector.load %arg5[%c0_5, %c0_6] : memref<128x128xbf16, #tpu.memory_space<vmem>>, vector<128x128xbf16>
    tpu.vector_store %arg5[%c0_5, %c0_6], %6 {strides = array<i32>} : memref<128x128xbf16, #tpu.memory_space<vmem>>, vector<128x128xbf16>,
    %cst_7 = arith.constant dense<0.000000e+00> : vector<128x128xf32>
    %8 = tpu.matmul %0, %4, %cst_7 {dimension_numbers = #tpu.dot_dimension_numbers<[1], [0], [0], [1], [0, 0, 1, 1], [], []>} : vector<128x128xbf16>, vector<128x128xbf16>, vector<128x128xf32> -> vector<128x128xf32>
    %c0_8 = arith.constant 0 : index
    %c0_9 = arith.constant 0 : index
    %9 = vector.load %arg4[%c0_8, %c0_9] : memref<1x128xf32, #tpu.memory_space<vmem>>, vector<1x128xf32>
    %10 = vector.broadcast %9 : vector<1x128xf32> to vector<128x128xf32>
    %11 = arith.addf %8, %10 : vector<128x128xf32>
    %c0_10 = arith.constant 0 : index
    %c0_11 = arith.constant 0 : index
    %12 = vector.load %arg6[%c0_10, %c0_11] : memref<128x128xf32, #tpu.memory_space<vmem>>, vector<128x128xf32>
    tpu.vector_store %arg6[%c0_10, %c0_11], %11 {strides = array<i32>} : memref<128x128xf32, #tpu.memory_space<vmem>>, vector<128x128xf32>,
    return
  }
  func.func @transform_0(%arg0: i32) -> (i32, i32) {
    %c0_i32 = arith.constant 0 : i32
    %c0_i32_0 = arith.constant 0 : i32
    return %arg0, %c0_i32 : i32, i32
  }
  func.func @transform_1(%arg0: i32) -> (i32, i32) {
    %c0_i32 = arith.constant 0 : i32
    %c0_i32_0 = arith.constant 0 : i32
    %c0_i32_1 = arith.constant 0 : i32
    return %c0_i32, %c0_i32_0 : i32, i32
  }
  func.func @transform_2(%arg0: i32) -> (i32, i32) {
    %c0_i32 = arith.constant 0 : i32
    %c0_i32_0 = arith.constant 0 : i32
    %c0_i32_1 = arith.constant 0 : i32
    return %c0_i32, %c0_i32_0 : i32, i32
  }
  func.func @transform_3(%arg0: i32) -> (i32, i32) {
    %c0_i32 = arith.constant 0 : i32
    %c0_i32_0 = arith.constant 0 : i32
    %c0_i32_1 = arith.constant 0 : i32
    return %c0_i32, %c0_i32_0 : i32, i32
  }
  func.func @transform_4(%arg0: i32) -> (i32, i32) {
    %c0_i32 = arith.constant 0 : i32
    %c0_i32_0 = arith.constant 0 : i32
    return %arg0, %c0_i32 : i32, i32
  }
  func.func @transform_5(%arg0: i32) -> (i32, i32) {
    %c0_i32 = arith.constant 0 : i32
    %c0_i32_0 = arith.constant 0 : i32
    return %arg0, %c0_i32 : i32, i32
  }
}

module attributes {stable_mosaic.version = 11 : i64} {
  func.func @_sage_aggregate_kernel(%arg0: i32, %arg1: i32, %arg2: memref<128x128xi8, #tpu.memory_space<vmem>>, %arg3: memref<128x128xbf16, #tpu.memory_space<vmem>>, %arg4: memref<128x128xf32, #tpu.memory_space<vmem>>, %arg5: memref<128x1xf32, #tpu.memory_space<vmem>>, %arg6: memref<128x128xf32, #tpu.memory_space<vmem>>) attributes {dimension_semantics = [#tpu.dimension_semantics<parallel>, #tpu.dimension_semantics<arbitrary>], iteration_bounds = array<i64: 1, 1>, scalar_prefetch = 0 : i64, scratch_operands = 0 : i64, tpu.core_type = #tpu.core_type<tc>, window_params = [{transform_indices = @transform_0, window_bounds = array<i64: 128, 128>}, {pipeline_mode = #tpu.pipeline_mode<synchronous>, transform_indices = @transform_1, window_bounds = array<i64: 128, 128>}, {transform_indices = @transform_2, window_bounds = array<i64: 128, 128>}, {transform_indices = @transform_3, window_bounds = array<i64: 128, 1>}, {transform_indices = @transform_4, window_bounds = array<i64: 128, 128>}]} {
    %c0_i32 = arith.constant 0 : i32
    %0 = arith.cmpi eq, %arg1, %c0_i32 : i32
    %1 = arith.extui %0 : i1 to i32
    %c0_i32_0 = arith.constant 0 : i32
    %2 = arith.cmpi ne, %1, %c0_i32_0 : i32
    scf.if %2 {
      %cst_9 = arith.constant 0.000000e+00 : f32
      %16 = vector.broadcast %cst_9 : f32 to vector<128x128xf32>
      %c0_10 = arith.constant 0 : index
      %c0_11 = arith.constant 0 : index
      %17 = vector.load %arg6[%c0_10, %c0_11] : memref<128x128xf32, #tpu.memory_space<vmem>>, vector<128x128xf32>
      tpu.vector_store %arg6[%c0_10, %c0_11], %16 {strides = array<i32>} : memref<128x128xf32, #tpu.memory_space<vmem>>, vector<128x128xf32>,
    } else {
    }
    %c0 = arith.constant 0 : index
    %c0_1 = arith.constant 0 : index
    %3 = vector.load %arg2[%c0, %c0_1] : memref<128x128xi8, #tpu.memory_space<vmem>>, vector<128x128xi8>
    %4 = arith.sitofp %3 : vector<128x128xi8> to vector<128x128xbf16>
    %c128_i32 = arith.constant 128 : i32
    %5 = arith.muli %arg1, %c128_i32 : i32
    %6 = tpu.assume_multiple %5, 128 : i32
    %7 = arith.index_cast %6 : i32 to index
    %c0_2 = arith.constant 0 : index
    %8 = vector.load %arg3[%7, %c0_2] : memref<128x128xbf16, #tpu.memory_space<vmem>>, vector<128x128xbf16>
    %c0_3 = arith.constant 0 : index
    %c0_4 = arith.constant 0 : index
    %9 = vector.load %arg6[%c0_3, %c0_4] : memref<128x128xf32, #tpu.memory_space<vmem>>, vector<128x128xf32>
    %cst = arith.constant dense<0.000000e+00> : vector<128x128xf32>
    %10 = tpu.matmul %4, %8, %cst {dimension_numbers = #tpu.dot_dimension_numbers<[1], [0], [0], [1], [0, 0, 1, 1], [], []>} : vector<128x128xbf16>, vector<128x128xbf16>, vector<128x128xf32> -> vector<128x128xf32>
    %11 = arith.addf %9, %10 : vector<128x128xf32>
    %c0_5 = arith.constant 0 : index
    %c0_6 = arith.constant 0 : index
    %12 = vector.load %arg6[%c0_5, %c0_6] : memref<128x128xf32, #tpu.memory_space<vmem>>, vector<128x128xf32>
    tpu.vector_store %arg6[%c0_5, %c0_6], %11 {strides = array<i32>} : memref<128x128xf32, #tpu.memory_space<vmem>>, vector<128x128xf32>,
    %c0_i32_7 = arith.constant 0 : i32
    %13 = arith.cmpi eq, %arg1, %c0_i32_7 : i32
    %14 = arith.extui %13 : i1 to i32
    %c0_i32_8 = arith.constant 0 : i32
    %15 = arith.cmpi ne, %14, %c0_i32_8 : i32
    scf.if %15 {
      %c0_9 = arith.constant 0 : index
      %c0_10 = arith.constant 0 : index
      %16 = vector.load %arg6[%c0_9, %c0_10] : memref<128x128xf32, #tpu.memory_space<vmem>>, vector<128x128xf32>
      %c0_11 = arith.constant 0 : index
      %c0_12 = arith.constant 0 : index
      %17 = vector.load %arg5[%c0_11, %c0_12] : memref<128x1xf32, #tpu.memory_space<vmem>>, vector<128x1xf32>
      %18 = vector.broadcast %17 : vector<128x1xf32> to vector<128x128xf32>
      %19 = arith.mulf %16, %18 : vector<128x128xf32>
      %c0_13 = arith.constant 0 : index
      %c0_14 = arith.constant 0 : index
      %20 = vector.load %arg4[%c0_13, %c0_14] : memref<128x128xf32, #tpu.memory_space<vmem>>, vector<128x128xf32>
      %21 = arith.addf %19, %20 : vector<128x128xf32>
      %c0_15 = arith.constant 0 : index
      %c0_16 = arith.constant 0 : index
      %22 = vector.load %arg6[%c0_15, %c0_16] : memref<128x128xf32, #tpu.memory_space<vmem>>, vector<128x128xf32>
      tpu.vector_store %arg6[%c0_15, %c0_16], %21 {strides = array<i32>} : memref<128x128xf32, #tpu.memory_space<vmem>>, vector<128x128xf32>,
    } else {
    }
    return
  }
  func.func @transform_0(%arg0: i32, %arg1: i32) -> (i32, i32) {
    %c0_i32 = arith.constant 0 : i32
    return %arg0, %arg1 : i32, i32
  }
  func.func @transform_1(%arg0: i32, %arg1: i32) -> (i32, i32) {
    %c0_i32 = arith.constant 0 : i32
    %c0_i32_0 = arith.constant 0 : i32
    %c0_i32_1 = arith.constant 0 : i32
    return %c0_i32, %c0_i32_0 : i32, i32
  }
  func.func @transform_2(%arg0: i32, %arg1: i32) -> (i32, i32) {
    %c0_i32 = arith.constant 0 : i32
    %c0_i32_0 = arith.constant 0 : i32
    return %arg0, %c0_i32 : i32, i32
  }
  func.func @transform_3(%arg0: i32, %arg1: i32) -> (i32, i32) {
    %c0_i32 = arith.constant 0 : i32
    %c0_i32_0 = arith.constant 0 : i32
    return %arg0, %c0_i32 : i32, i32
  }
  func.func @transform_4(%arg0: i32, %arg1: i32) -> (i32, i32) {
    %c0_i32 = arith.constant 0 : i32
    %c0_i32_0 = arith.constant 0 : i32
    return %arg0, %c0_i32 : i32, i32
  }
}

</mosaic_0001>

<bundles_post_ra>
// kernel: gnn_forward.4
= control target key start
LH: loop header
LB: loop body
LE: loop exit
PB: predicated region body
PF: predicated region fallthrough
CT: control target
= control target key end

     0   :  { %s840_s1 = inlined_call_operand.vmem [shape: f32[128,128], index: 1, kind: input, shape index: {}]   ;;  %s841_s2 = inlined_call_operand.vmem [shape: f32[128,128], index: 2, kind: input, shape index: {}]   ;;  %s842_s0 = inlined_call_operand.vmem [shape: f32[128,128], index: 0, kind: input, shape index: {}]   ;;  %s843_s3 = inlined_call_operand.vmem [shape: f32[1,128], index: 3, kind: input, shape index: {}]   ;;  %s844_s5 = inlined_call_operand.vmem [shape: f32[128,128], index: 5, kind: output, shape index: {1}]   ;;  %s845_s4 = inlined_call_operand.vmem [shape: bf16[128,128], index: 4, kind: output, shape index: {0}]  }
   0x1   :  { %v44_v0 = vld [vmem:[%s840_s1] sm:$0xff]  ;;  %v45_v1 = vld [vmem:[%s840_s1 + $0x8] sm:$0xff]  ;;  %v46_v5 = vld [vmem:[%s840_s1 + $0x10] sm:$0xff] }
   0x2   :  { %v68_v2 = vld [vmem:[%s841_s2] sm:$0xff]  ;;  %v60_v3 = vpack.c.bf16 %v45_v1, %v44_v0  ;;  %v69_v4 = vld [vmem:[%s841_s2 + $0x8] sm:$0xff]  ;;  %v47_v6 = vld [vmem:[%s840_s1 + $0x18] sm:$0xff] }
   0x3   :  { %v84_v7 = vpack.c.bf16 %v69_v4, %v68_v2  ;;  %v61_v8 = vpack.c.bf16 %v47_v6, %v46_v5  ;;  %v70_v9 = vld [vmem:[%s841_s2 + $0x10] sm:$0xff]  ;;  %v71_v10 = vld [vmem:[%s841_s2 + $0x18] sm:$0xff]  ;;  %v48_v11 = vld [vmem:[%s840_s1 + $0x20] sm:$0xff] }
   0x4   :  { %509 = vmatprep.subr.bf16.mxu0 %v60_v3  ;;  %v85_v12 = vpack.c.bf16 %v71_v10, %v70_v9  ;;  %v49_v13 = vld [vmem:[%s840_s1 + $0x28] sm:$0xff]  ;;  %v72_v14 = vld [vmem:[%s841_s2 + $0x20] sm:$0xff]  ;;  %v50_v18 = vld [vmem:[%s840_s1 + $0x30] sm:$0xff] }
   0x5   :  { %v73_v15 = vld [vmem:[%s841_s2 + $0x28] sm:$0xff]  ;;  %541 = vmatprep.subr.bf16.mxu1 %v84_v7  ;;  %510 = vmatpush3.bf16.msra.mxu0 %v60_v3  ;;  %v62_v16 = vpack.c.bf16 %v49_v13, %v48_v11  ;;  %v51_v19 = vld [vmem:[%s840_s1 + $0x38] sm:$0xff]  ;;  %v74_v20 = vld [vmem:[%s841_s2 + $0x30] sm:$0xff] }
   0x6   :  { %542 = vmatpush3.bf16.msra.mxu1 %v84_v7  ;;  %511 = vmatprep.subr.bf16.mxu0 %v61_v8  ;;  %v86_v17 = vpack.c.bf16 %v73_v15, %v72_v14  ;;  %v75_v21 = vld [vmem:[%s841_s2 + $0x38] sm:$0xff]  ;;  %v63_v22 = vpack.c.bf16 %v51_v19, %v50_v18  ;;  %v52_v24 = vld [vmem:[%s840_s1 + $0x40] sm:$0xff]  ;;  %v53_v25 = vld [vmem:[%s840_s1 + $0x48] sm:$0xff] }
   0x7   :  { %543 = vmatprep.subr.bf16.mxu1 %v85_v12  ;;  %v87_v23 = vpack.c.bf16 %v75_v21, %v74_v20  ;;  %v20_v26 = vld [vmem:[%s842_s0] sm:$0xff]  ;;  %v77_v28 = vld [vmem:[%s841_s2 + $0x48] sm:$0xff]  ;;  %v64_v31 = vpack.c.bf16 %v53_v25, %v52_v24  ;;  %v54_v33 = vld [vmem:[%s840_s1 + $0x50] sm:$0xff] }
   0x8   :  { %v76_v27 = vld [vmem:[%s841_s2 + $0x40] sm:$0xff]  ;;  %v21_v29 = vld [vmem:[%s842_s0 + $0x8] sm:$0xff]  ;;  %v55_v34 = vld [vmem:[%s840_s1 + $0x58] sm:$0xff] }
   0x9   :  { %512 = vmatpush3.bf16.msra.mxu0 %v61_v8  ;;  %v36_v30 = vpack.c.bf16 %v21_v29, %v20_v26  ;;  %v88_v32 = vpack.c.bf16 %v77_v28, %v76_v27  ;;  %v78_v35 = vld [vmem:[%s841_s2 + $0x50] sm:$0xff]  ;;  %v79_v36 = vld [vmem:[%s841_s2 + $0x58] sm:$0xff]  ;;  %v65_v37 = vpack.c.bf16 %v55_v34, %v54_v33  ;;  %v56_v39 = vld [vmem:[%s840_s1 + $0x60] sm:$0xff] }
   0xa   :  { %544 = vmatpush3.bf16.msra.mxu1 %v85_v12  ;;  %513 = vmatprep.subr.bf16.mxu0 %v62_v16  ;;  %v89_v38 = vpack.c.bf16 %v79_v36, %v78_v35  ;;  %v57_v40 = vld [vmem:[%s840_s1 + $0x68] sm:$0xff]  ;;  %v80_v41 = vld [vmem:[%s841_s2 + $0x60] sm:$0xff]  ;;  %v58_v45 = vld [vmem:[%s840_s1 + $0x70] sm:$0xff] }
   0xb   :  { %545 = vmatprep.subr.bf16.mxu1 %v86_v17  ;;  %525 = vmatprep.mubr.bf16.mxu0 %v36_v30  ;;  %v81_v42 = vld [vmem:[%s841_s2 + $0x68] sm:$0xff]  ;;  %v66_v43 = vpack.c.bf16 %v57_v40, %v56_v39  ;;  %v59_v46 = vld [vmem:[%s840_s1 + $0x78] sm:$0xff]  ;;  %v82_v47 = vld [vmem:[%s841_s2 + $0x70] sm:$0xff] }
   0xc   :  { %557 = vmatprep.mubr.bf16.mxu1 %v36_v30  ;;  %v90_v44 = vpack.c.bf16 %v81_v42, %v80_v41  ;;  %v83_v48 = vld [vmem:[%s841_s2 + $0x78] sm:$0xff]  ;;  %v67_v49 = vpack.c.bf16 %v59_v46, %v58_v45  ;;  %v22_v51 = vld [vmem:[%s842_s0 + $0x10] sm:$0xff]  ;;  %v24_v53 = vld [vmem:[%s842_s0 + $0x20] sm:$0xff] }
   0xd   :  { %514 = vmatpush3.bf16.msra.mxu0 %v62_v16  ;;  %v91_v50 = vpack.c.bf16 %v83_v48, %v82_v47  ;;  %v23_v52 = vld [vmem:[%s842_s0 + $0x18] sm:$0xff]  ;;  %v25_v54 = vld [vmem:[%s842_s0 + $0x28] sm:$0xff]  ;;  %v26_v57 = vld [vmem:[%s842_s0 + $0x30] sm:$0xff] }
   0xe   :  { %546 = vmatpush3.bf16.msra.mxu1 %v86_v17  ;;  %515 = vmatprep.subr.bf16.mxu0 %v63_v22  ;;  %v37_v55 = vpack.c.bf16 %v23_v52, %v22_v51  ;;  %v38_v56 = vpack.c.bf16 %v25_v54, %v24_v53  ;;  %v27_v58 = vld [vmem:[%s842_s0 + $0x38] sm:$0xff]  ;;  %v28_v59 = vld [vmem:[%s842_s0 + $0x40] sm:$0xff]  ;;  %v29_v60 = vld [vmem:[%s842_s0 + $0x48] sm:$0xff] }
   0xf   :  { %547 = vmatprep.subr.bf16.mxu1 %v87_v23  ;;  %v39_v61 = vpack.c.bf16 %v27_v58, %v26_v57  ;;  %v40_v62 = vpack.c.bf16 %v29_v60, %v28_v59  ;;  %v30_v63 = vld [vmem:[%s842_s0 + $0x50] sm:$0xff]  ;;  %v31_v0 = vld [vmem:[%s842_s0 + $0x58] sm:$0xff]  ;;  %v32_v1 = vld [vmem:[%s842_s0 + $0x60] sm:$0xff] }
  0x10   :  { %v33_v2 = vld [vmem:[%s842_s0 + $0x68] sm:$0xff]  ;;  %v41_v3 = vpack.c.bf16 %v31_v0, %v30_v63  ;;  %v34_v5 = vld [vmem:[%s842_s0 + $0x70] sm:$0xff]  ;;  %v35_v6 = vld [vmem:[%s842_s0 + $0x78] sm:$0xff] }
  0x11   :  { %516 = vmatpush3.bf16.msra.mxu0 %v63_v22  ;;  %v42_v4 = vpack.c.bf16 %v33_v2, %v32_v1  ;;  %v43_v7 = vpack.c.bf16 %v35_v6, %v34_v5  ;;  %v750_v8 = vld [vmem:[%s843_s3] ss:$0 sm:$0xff] }
  0x12   :  { %548 = vmatpush3.bf16.msra.mxu1 %v87_v23  ;;  %517 = vmatprep.subr.bf16.mxu0 %v64_v31 }
  0x13   :  { %549 = vmatprep.subr.bf16.mxu1 %v88_v32 }
  0x15   :  { %518 = vmatpush3.bf16.msra.mxu0 %v64_v31 }
  0x16   :  { %550 = vmatpush3.bf16.msra.mxu1 %v88_v32  ;;  %519 = vmatprep.subr.bf16.mxu0 %v65_v37 }
  0x17   :  { %551 = vmatprep.subr.bf16.mxu1 %v89_v38 }
  0x19   :  { %520 = vmatpush3.bf16.msra.mxu0 %v65_v37 }
  0x1a   :  { %552 = vmatpush3.bf16.msra.mxu1 %v89_v38  ;;  %521 = vmatprep.subr.bf16.mxu0 %v66_v43 }
  0x1b   :  { %553 = vmatprep.subr.bf16.mxu1 %v90_v44 }
  0x1d   :  { %522 = vmatpush3.bf16.msra.mxu0 %v66_v43 }
  0x1e   :  { %554 = vmatpush3.bf16.msra.mxu1 %v90_v44  ;;  %523 = vmatprep.subr.bf16.mxu0 %v67_v49 }
  0x1f   :  { %555 = vmatprep.subr.bf16.mxu1 %v91_v50 }
  0x21   :  { %524 = vmatpush3.bf16.msra.mxu0 %v67_v49 }
  0x22   :  { %556 = vmatpush3.bf16.msra.mxu1 %v91_v50 }
  0x24   :  { %526 = vmatmul.mubr.bf16.vlgmr.msra.gmra.mrb[0].mxu0 %v37_v55 }
  0x25   :  { %558 = vmatmul.mubr.bf16.vlgmr.msra.gmra.mrb[0].mxu1 %v37_v55  ;;  %529 = vmatprep.mubr.bf16.mxu0 %v38_v56 }
  0x26   :  { %561 = vmatprep.mubr.bf16.mxu1 %v38_v56 }
  0x2c   :  { %530 = vmatmul.mubr.bf16.gmra.mrb[4].mxu0 %v39_v61 }
  0x2d   :  { %562 = vmatmul.mubr.bf16.gmra.mrb[4].mxu1 %v39_v61  ;;  %533 = vmatprep.mubr.bf16.mxu0 %v40_v62 }
  0x2e   :  { %565 = vmatprep.mubr.bf16.mxu1 %v40_v62 }
  0x34   :  { %534 = vmatmul.mubr.bf16.gmra.mrb[8].mxu0 %v41_v3 }
  0x35   :  { %566 = vmatmul.mubr.bf16.gmra.mrb[8].mxu1 %v41_v3  ;;  %537 = vmatprep.mubr.bf16.mxu0 %v42_v4 }
  0x36   :  { %569 = vmatprep.mubr.bf16.mxu1 %v42_v4 }
  0x3c   :  { %538 = vmatmul.mubr.bf16.gmra.mrb[12].mxu0 %v43_v7 }
  0x3d   :  { %570 = vmatmul.mubr.bf16.gmra.mrb[12].mxu1 %v43_v7 }
  0xf7   :  { %v527_v9 = vpop.f32.mrb[0].mxu0 }
  0xf8   :  { %v559_v10 = vpop.f32.mrb[0].mxu1  ;;  %v126_v11 = vpop.f32.mrb[1].mxu0 }
  0xf9   :  { %v319_v12 = vadd.f32 %v559_v10, %v750_v8  ;;  %v310_v13 = vpop.f32.mrb[1].mxu1  ;;  %v528_v14 = vpop.f32.mrb[2].mxu0 }
  0xfa   :  { %v311_v15 = vadd.f32 %v750_v8, %v310_v13  ;;  %v438_v16 = vpack.c.bf16 %v528_v14, %v527_v9  ;;  %v560_v17 = vpop.f32.mrb[2].mxu1  ;;  %v129_v18 = vpop.f32.mrb[3].mxu0 }
  0xfb   :  { %375 = vst [vmem:[%s844_s5 + $0x10] sm:$0xff] %v319_v12  ;;  %v322_v19 = vadd.f32 %v560_v17, %v750_v8  ;;  %v433_v20 = vpack.c.bf16 %v129_v18, %v126_v11  ;;  %v313_v21 = vpop.f32.mrb[3].mxu1 }
  0xfc   :  { %373 = vst [vmem:[%s844_s5] sm:$0xff] %v311_v15  ;;  %470 = vst [vmem:[%s845_s4 + $0x8] sm:$0xff] %v438_v16   ;;  %v314_v22 = vadd.f32 %v750_v8, %v313_v21 }
  0xfd   :  { %376 = vst [vmem:[%s844_s5 + $0x18] sm:$0xff] %v322_v19  ;;  %434 = vst [vmem:[%s845_s4] sm:$0xff] %v433_v20  }
  0xfe   :  { %374 = vst [vmem:[%s844_s5 + $0x8] sm:$0xff] %v314_v22 }
  0xff   :  { %v531_v23 = vpop.f32.mrb[4].mxu0 }
 0x100   :  { %v563_v24 = vpop.f32.mrb[4].mxu1  ;;  %v142_v25 = vpop.f32.mrb[5].mxu0 }
 0x101   :  { %v335_v26 = vadd.f32 %v563_v24, %v750_v8  ;;  %v326_v27 = vpop.f32.mrb[5].mxu1  ;;  %v532_v28 = vpop.f32.mrb[6].mxu0 }
 0x102   :  { %v327_v29 = vadd.f32 %v750_v8, %v326_v27  ;;  %v448_v30 = vpack.c.bf16 %v532_v28, %v531_v23  ;;  %v564_v31 = vpop.f32.mrb[6].mxu1  ;;  %v145_v32 = vpop.f32.mrb[7].mxu0 }
 0x103   :  { %379 = vst [vmem:[%s844_s5 + $0x30] sm:$0xff] %v335_v26  ;;  %v338_v33 = vadd.f32 %v564_v31, %v750_v8  ;;  %v443_v34 = vpack.c.bf16 %v145_v32, %v142_v25  ;;  %v329_v35 = vpop.f32.mrb[7].mxu1 }
 0x104   :  { %377 = vst [vmem:[%s844_s5 + $0x20] sm:$0xff] %v327_v29  ;;  %472 = vst [vmem:[%s845_s4 + $0x18] sm:$0xff] %v448_v30   ;;  %v330_v36 = vadd.f32 %v750_v8, %v329_v35 }
 0x105   :  { %380 = vst [vmem:[%s844_s5 + $0x38] sm:$0xff] %v338_v33  ;;  %471 = vst [vmem:[%s845_s4 + $0x10] sm:$0xff] %v443_v34  }
 0x106   :  { %378 = vst [vmem:[%s844_s5 + $0x28] sm:$0xff] %v330_v36 }
 0x107   :  { %v535_v37 = vpop.f32.mrb[8].mxu0 }
 0x108   :  { %v567_v38 = vpop.f32.mrb[8].mxu1  ;;  %v158_v39 = vpop.f32.mrb[9].mxu0 }
 0x109   :  { %v351_v40 = vadd.f32 %v567_v38, %v750_v8  ;;  %v342_v41 = vpop.f32.mrb[9].mxu1  ;;  %v536_v42 = vpop.f32.mrb[10].mxu0 }
 0x10a   :  { %v343_v43 = vadd.f32 %v750_v8, %v342_v41  ;;  %v458_v44 = vpack.c.bf16 %v536_v42, %v535_v37  ;;  %v568_v45 = vpop.f32.mrb[10].mxu1  ;;  %v161_v46 = vpop.f32.mrb[11].mxu0 }
 0x10b   :  { %383 = vst [vmem:[%s844_s5 + $0x50] sm:$0xff] %v351_v40  ;;  %v354_v47 = vadd.f32 %v568_v45, %v750_v8  ;;  %v453_v48 = vpack.c.bf16 %v161_v46, %v158_v39  ;;  %v345_v49 = vpop.f32.mrb[11].mxu1 }
 0x10c   :  { %381 = vst [vmem:[%s844_s5 + $0x40] sm:$0xff] %v343_v43  ;;  %474 = vst [vmem:[%s845_s4 + $0x28] sm:$0xff] %v458_v44   ;;  %v346_v50 = vadd.f32 %v750_v8, %v345_v49 }
 0x10d   :  { %384 = vst [vmem:[%s844_s5 + $0x58] sm:$0xff] %v354_v47  ;;  %473 = vst [vmem:[%s845_s4 + $0x20] sm:$0xff] %v453_v48  }
 0x10e   :  { %382 = vst [vmem:[%s844_s5 + $0x48] sm:$0xff] %v346_v50 }
 0x10f   :  { %v539_v51 = vpop.f32.mrb[12].mxu0 }
 0x110   :  { %v571_v52 = vpop.f32.mrb[12].mxu1  ;;  %v174_v53 = vpop.f32.mrb[13].mxu0 }
 0x111   :  { %v367_v54 = vadd.f32 %v571_v52, %v750_v8  ;;  %v358_v55 = vpop.f32.mrb[13].mxu1  ;;  %v540_v56 = vpop.f32.mrb[14].mxu0 }
 0x112   :  { %v359_v57 = vadd.f32 %v750_v8, %v358_v55  ;;  %v468_v58 = vpack.c.bf16 %v540_v56, %v539_v51  ;;  %v572_v59 = vpop.f32.mrb[14].mxu1  ;;  %v177_v60 = vpop.f32.mrb[15].mxu0 }
 0x113   :  { %387 = vst [vmem:[%s844_s5 + $0x70] sm:$0xff] %v367_v54  ;;  %v370_v61 = vadd.f32 %v572_v59, %v750_v8  ;;  %v463_v62 = vpack.c.bf16 %v177_v60, %v174_v53  ;;  %v361_v63 = vpop.f32.mrb[15].mxu1 }
 0x114   :  { %385 = vst [vmem:[%s844_s5 + $0x60] sm:$0xff] %v359_v57  ;;  %476 = vst [vmem:[%s845_s4 + $0x38] sm:$0xff] %v468_v58   ;;  %v362_v0 = vadd.f32 %v750_v8, %v361_v63 }
 0x115   :  { %388 = vst [vmem:[%s844_s5 + $0x78] sm:$0xff] %v370_v61  ;;  %475 = vst [vmem:[%s845_s4 + $0x30] sm:$0xff] %v463_v62  }
 0x116   :  { %386 = vst [vmem:[%s844_s5 + $0x68] sm:$0xff] %v362_v0 }

// kernel: gnn_forward.6
= control target key start
LH: loop header
LB: loop body
LE: loop exit
PB: predicated region body
PF: predicated region fallthrough
CT: control target
= control target key end

     0   :  { %s872_s1 = inlined_call_operand.vmem [shape: f32[128,128], index: 1, kind: input, shape index: {}]   ;;  %s873_s2 = inlined_call_operand.vmem [shape: f32[128,128], index: 2, kind: input, shape index: {}]   ;;  %s874_s0 = inlined_call_operand.vmem [shape: bf16[128,128], index: 0, kind: input, shape index: {}]   ;;  %s875_s3 = inlined_call_operand.vmem [shape: f32[1,128], index: 3, kind: input, shape index: {}]   ;;  %s876_s5 = inlined_call_operand.vmem [shape: f32[128,128], index: 5, kind: output, shape index: {1}]   ;;  %s877_s4 = inlined_call_operand.vmem [shape: bf16[128,128], index: 4, kind: output, shape index: {0}]  }
   0x1   :  { %v36_v0 = vld [vmem:[%s872_s1] sm:$0xff]  ;;  %v37_v1 = vld [vmem:[%s872_s1 + $0x8] sm:$0xff]  ;;  %v38_v5 = vld [vmem:[%s872_s1 + $0x10] sm:$0xff] }
   0x2   :  { %v60_v2 = vld [vmem:[%s873_s2] sm:$0xff]  ;;  %v52_v3 = vpack.c.bf16 %v37_v1, %v36_v0  ;;  %v61_v4 = vld [vmem:[%s873_s2 + $0x8] sm:$0xff]  ;;  %v39_v6 = vld [vmem:[%s872_s1 + $0x18] sm:$0xff] }
   0x3   :  { %v76_v7 = vpack.c.bf16 %v61_v4, %v60_v2  ;;  %v53_v8 = vpack.c.bf16 %v39_v6, %v38_v5  ;;  %v62_v9 = vld [vmem:[%s873_s2 + $0x10] sm:$0xff]  ;;  %v63_v10 = vld [vmem:[%s873_s2 + $0x18] sm:$0xff]  ;;  %v40_v11 = vld [vmem:[%s872_s1 + $0x20] sm:$0xff] }
   0x4   :  { %557 = vmatprep.subr.bf16.mxu0 %v52_v3  ;;  %v77_v12 = vpack.c.bf16 %v63_v10, %v62_v9  ;;  %v41_v13 = vld [vmem:[%s872_s1 + $0x28] sm:$0xff]  ;;  %v64_v14 = vld [vmem:[%s873_s2 + $0x20] sm:$0xff]  ;;  %v42_v18 = vld [vmem:[%s872_s1 + $0x30] sm:$0xff] }
   0x5   :  { %v65_v15 = vld [vmem:[%s873_s2 + $0x28] sm:$0xff]  ;;  %589 = vmatprep.subr.bf16.mxu1 %v76_v7  ;;  %558 = vmatpush3.bf16.msra.mxu0 %v52_v3  ;;  %v54_v16 = vpack.c.bf16 %v41_v13, %v40_v11  ;;  %v43_v19 = vld [vmem:[%s872_s1 + $0x38] sm:$0xff]  ;;  %v66_v20 = vld [vmem:[%s873_s2 + $0x30] sm:$0xff] }
   0x6   :  { %590 = vmatpush3.bf16.msra.mxu1 %v76_v7  ;;  %559 = vmatprep.subr.bf16.mxu0 %v53_v8  ;;  %v78_v17 = vpack.c.bf16 %v65_v15, %v64_v14  ;;  %v67_v21 = vld [vmem:[%s873_s2 + $0x38] sm:$0xff]  ;;  %v55_v22 = vpack.c.bf16 %v43_v19, %v42_v18  ;;  %v44_v23 = vld [vmem:[%s872_s1 + $0x40] sm:$0xff]  ;;  %v45_v24 = vld [vmem:[%s872_s1 + $0x48] sm:$0xff] }
   0x7   :  { %591 = vmatprep.subr.bf16.mxu1 %v77_v12  ;;  %v79_v25 = vpack.c.bf16 %v67_v21, %v66_v20  ;;  %v68_v26 = vld [vmem:[%s873_s2 + $0x40] sm:$0xff]  ;;  %v69_v27 = vld [vmem:[%s873_s2 + $0x48] sm:$0xff]  ;;  %v46_v29 = vld [vmem:[%s872_s1 + $0x50] sm:$0xff]  ;;  %v56_v30 = vpack.c.bf16 %v45_v24, %v44_v23 }
   0x8   :  { %v621_v28 = vld [vmem:[%s874_s0] sm:$0xff]   ;;  %v47_v31 = vld [vmem:[%s872_s1 + $0x58] sm:$0xff]  ;;  %v80_v32 = vpack.c.bf16 %v69_v27, %v68_v26  ;;  %v70_v33 = vld [vmem:[%s873_s2 + $0x50] sm:$0xff] }
   0x9   :  { %560 = vmatpush3.bf16.msra.mxu0 %v53_v8  ;;  %573 = vmatprep.mubr.bf16.mxu0 %v621_v28  ;;  %v71_v34 = vld [vmem:[%s873_s2 + $0x58] sm:$0xff]  ;;  %v57_v35 = vpack.c.bf16 %v47_v31, %v46_v29  ;;  %v48_v37 = vld [vmem:[%s872_s1 + $0x60] sm:$0xff]  ;;  %v49_v38 = vld [vmem:[%s872_s1 + $0x68] sm:$0xff] }
   0xa   :  { %592 = vmatpush3.bf16.msra.mxu1 %v77_v12  ;;  %561 = vmatprep.subr.bf16.mxu0 %v54_v16  ;;  %v81_v36 = vpack.c.bf16 %v71_v34, %v70_v33  ;;  %v72_v39 = vld [vmem:[%s873_s2 + $0x60] sm:$0xff]  ;;  %v73_v40 = vld [vmem:[%s873_s2 + $0x68] sm:$0xff]  ;;  %v58_v41 = vpack.c.bf16 %v49_v38, %v48_v37  ;;  %v50_v43 = vld [vmem:[%s872_s1 + $0x70] sm:$0xff] }
   0xb   :  { %593 = vmatprep.subr.bf16.mxu1 %v78_v17  ;;  %605 = vmatprep.mubr.bf16.mxu1 %v621_v28  ;;  %v82_v42 = vpack.c.bf16 %v73_v40, %v72_v39  ;;  %v51_v44 = vld [vmem:[%s872_s1 + $0x78] sm:$0xff]  ;;  %v74_v45 = vld [vmem:[%s873_s2 + $0x70] sm:$0xff]  ;;  %v622_v49 = vld [vmem:[%s874_s0 + $0x8] sm:$0xff]  }
   0xc   :  { %v75_v46 = vld [vmem:[%s873_s2 + $0x78] sm:$0xff]  ;;  %v59_v47 = vpack.c.bf16 %v51_v44, %v50_v43  ;;  %v623_v50 = vld [vmem:[%s874_s0 + $0x10] sm:$0xff]   ;;  %v625_v52 = vld [vmem:[%s874_s0 + $0x20] sm:$0xff]  }
   0xd   :  { %562 = vmatpush3.bf16.msra.mxu0 %v54_v16  ;;  %v83_v48 = vpack.c.bf16 %v75_v46, %v74_v45  ;;  %v624_v51 = vld [vmem:[%s874_s0 + $0x18] sm:$0xff]   ;;  %v626_v53 = vld [vmem:[%s874_s0 + $0x28] sm:$0xff]   ;;  %v627_v54 = vld [vmem:[%s874_s0 + $0x30] sm:$0xff]  }
   0xe   :  { %594 = vmatpush3.bf16.msra.mxu1 %v78_v17  ;;  %563 = vmatprep.subr.bf16.mxu0 %v55_v22  ;;  %v628_v55 = vld [vmem:[%s874_s0 + $0x38] sm:$0xff]   ;;  %v782_v56 = vld [vmem:[%s875_s3] ss:$0 sm:$0xff] }
   0xf   :  { %595 = vmatprep.subr.bf16.mxu1 %v79_v25 }
  0x11   :  { %564 = vmatpush3.bf16.msra.mxu0 %v55_v22 }
  0x12   :  { %596 = vmatpush3.bf16.msra.mxu1 %v79_v25  ;;  %565 = vmatprep.subr.bf16.mxu0 %v56_v30 }
  0x13   :  { %597 = vmatprep.subr.bf16.mxu1 %v80_v32 }
  0x15   :  { %566 = vmatpush3.bf16.msra.mxu0 %v56_v30 }
  0x16   :  { %598 = vmatpush3.bf16.msra.mxu1 %v80_v32  ;;  %567 = vmatprep.subr.bf16.mxu0 %v57_v35 }
  0x17   :  { %599 = vmatprep.subr.bf16.mxu1 %v81_v36 }
  0x19   :  { %568 = vmatpush3.bf16.msra.mxu0 %v57_v35 }
  0x1a   :  { %600 = vmatpush3.bf16.msra.mxu1 %v81_v36  ;;  %569 = vmatprep.subr.bf16.mxu0 %v58_v41 }
  0x1b   :  { %601 = vmatprep.subr.bf16.mxu1 %v82_v42 }
  0x1d   :  { %570 = vmatpush3.bf16.msra.mxu0 %v58_v41 }
  0x1e   :  { %602 = vmatpush3.bf16.msra.mxu1 %v82_v42  ;;  %571 = vmatprep.subr.bf16.mxu0 %v59_v47 }
  0x1f   :  { %603 = vmatprep.subr.bf16.mxu1 %v83_v48 }
  0x21   :  { %572 = vmatpush3.bf16.msra.mxu0 %v59_v47 }
  0x22   :  { %604 = vmatpush3.bf16.msra.mxu1 %v83_v48 }
  0x24   :  { %574 = vmatmul.mubr.bf16.vlgmr.msra.gmra.mrb[0].mxu0 %v622_v49 }
  0x25   :  { %606 = vmatmul.mubr.bf16.vlgmr.msra.gmra.mrb[0].mxu1 %v622_v49  ;;  %577 = vmatprep.mubr.bf16.mxu0 %v623_v50 }
  0x26   :  { %609 = vmatprep.mubr.bf16.mxu1 %v623_v50 }
  0x2c   :  { %578 = vmatmul.mubr.bf16.gmra.mrb[4].mxu0 %v624_v51 }
  0x2d   :  { %610 = vmatmul.mubr.bf16.gmra.mrb[4].mxu1 %v624_v51  ;;  %581 = vmatprep.mubr.bf16.mxu0 %v625_v52 }
  0x2e   :  { %613 = vmatprep.mubr.bf16.mxu1 %v625_v52 }
  0x34   :  { %582 = vmatmul.mubr.bf16.gmra.mrb[8].mxu0 %v626_v53 }
  0x35   :  { %614 = vmatmul.mubr.bf16.gmra.mrb[8].mxu1 %v626_v53  ;;  %585 = vmatprep.mubr.bf16.mxu0 %v627_v54 }
  0x36   :  { %617 = vmatprep.mubr.bf16.mxu1 %v627_v54 }
  0x3c   :  { %586 = vmatmul.mubr.bf16.gmra.mrb[12].mxu0 %v628_v55 }
  0x3d   :  { %618 = vmatmul.mubr.bf16.gmra.mrb[12].mxu1 %v628_v55 }
  0xf7   :  { %v575_v57 = vpop.f32.mrb[0].mxu0 }
  0xf8   :  { %v607_v58 = vpop.f32.mrb[0].mxu1  ;;  %v166_v59 = vpop.f32.mrb[1].mxu0 }
  0xf9   :  { %v359_v60 = vadd.f32 %v607_v58, %v782_v56  ;;  %v350_v61 = vpop.f32.mrb[1].mxu1  ;;  %v576_v62 = vpop.f32.mrb[2].mxu0 }
  0xfa   :  { %v351_v63 = vadd.f32 %v782_v56, %v350_v61  ;;  %v486_v0 = vpack.c.bf16 %v576_v62, %v575_v57  ;;  %v608_v1 = vpop.f32.mrb[2].mxu1  ;;  %v169_v2 = vpop.f32.mrb[3].mxu0 }
  0xfb   :  { %415 = vst [vmem:[%s876_s5 + $0x10] sm:$0xff] %v359_v60  ;;  %v362_v3 = vadd.f32 %v608_v1, %v782_v56  ;;  %v481_v4 = vpack.c.bf16 %v169_v2, %v166_v59  ;;  %v353_v5 = vpop.f32.mrb[3].mxu1 }
  0xfc   :  { %413 = vst [vmem:[%s876_s5] sm:$0xff] %v351_v63  ;;  %518 = vst [vmem:[%s877_s4 + $0x8] sm:$0xff] %v486_v0   ;;  %v354_v6 = vadd.f32 %v782_v56, %v353_v5 }
  0xfd   :  { %416 = vst [vmem:[%s876_s5 + $0x18] sm:$0xff] %v362_v3  ;;  %482 = vst [vmem:[%s877_s4] sm:$0xff] %v481_v4  }
  0xfe   :  { %414 = vst [vmem:[%s876_s5 + $0x8] sm:$0xff] %v354_v6 }
  0xff   :  { %v579_v7 = vpop.f32.mrb[4].mxu0 }
 0x100   :  { %v611_v8 = vpop.f32.mrb[4].mxu1  ;;  %v182_v9 = vpop.f32.mrb[5].mxu0 }
 0x101   :  { %v375_v10 = vadd.f32 %v611_v8, %v782_v56  ;;  %v366_v11 = vpop.f32.mrb[5].mxu1  ;;  %v580_v12 = vpop.f32.mrb[6].mxu0 }
 0x102   :  { %v367_v13 = vadd.f32 %v782_v56, %v366_v11  ;;  %v496_v14 = vpack.c.bf16 %v580_v12, %v579_v7  ;;  %v612_v15 = vpop.f32.mrb[6].mxu1  ;;  %v185_v16 = vpop.f32.mrb[7].mxu0 }
 0x103   :  { %419 = vst [vmem:[%s876_s5 + $0x30] sm:$0xff] %v375_v10  ;;  %v378_v17 = vadd.f32 %v612_v15, %v782_v56  ;;  %v491_v18 = vpack.c.bf16 %v185_v16, %v182_v9  ;;  %v369_v19 = vpop.f32.mrb[7].mxu1 }
 0x104   :  { %417 = vst [vmem:[%s876_s5 + $0x20] sm:$0xff] %v367_v13  ;;  %520 = vst [vmem:[%s877_s4 + $0x18] sm:$0xff] %v496_v14   ;;  %v370_v20 = vadd.f32 %v782_v56, %v369_v19 }
 0x105   :  { %420 = vst [vmem:[%s876_s5 + $0x38] sm:$0xff] %v378_v17  ;;  %519 = vst [vmem:[%s877_s4 + $0x10] sm:$0xff] %v491_v18  }
 0x106   :  { %418 = vst [vmem:[%s876_s5 + $0x28] sm:$0xff] %v370_v20 }
 0x107   :  { %v583_v21 = vpop.f32.mrb[8].mxu0 }
 0x108   :  { %v615_v22 = vpop.f32.mrb[8].mxu1  ;;  %v198_v23 = vpop.f32.mrb[9].mxu0 }
 0x109   :  { %v391_v24 = vadd.f32 %v615_v22, %v782_v56  ;;  %v382_v25 = vpop.f32.mrb[9].mxu1  ;;  %v584_v26 = vpop.f32.mrb[10].mxu0 }
 0x10a   :  { %v383_v27 = vadd.f32 %v782_v56, %v382_v25  ;;  %v506_v28 = vpack.c.bf16 %v584_v26, %v583_v21  ;;  %v616_v29 = vpop.f32.mrb[10].mxu1  ;;  %v201_v30 = vpop.f32.mrb[11].mxu0 }
 0x10b   :  { %423 = vst [vmem:[%s876_s5 + $0x50] sm:$0xff] %v391_v24  ;;  %v394_v31 = vadd.f32 %v616_v29, %v782_v56  ;;  %v501_v32 = vpack.c.bf16 %v201_v30, %v198_v23  ;;  %v385_v33 = vpop.f32.mrb[11].mxu1 }
 0x10c   :  { %421 = vst [vmem:[%s876_s5 + $0x40] sm:$0xff] %v383_v27  ;;  %522 = vst [vmem:[%s877_s4 + $0x28] sm:$0xff] %v506_v28   ;;  %v386_v34 = vadd.f32 %v782_v56, %v385_v33 }
 0x10d   :  { %424 = vst [vmem:[%s876_s5 + $0x58] sm:$0xff] %v394_v31  ;;  %521 = vst [vmem:[%s877_s4 + $0x20] sm:$0xff] %v501_v32  }
 0x10e   :  { %422 = vst [vmem:[%s876_s5 + $0x48] sm:$0xff] %v386_v34 }
 0x10f   :  { %v587_v35 = vpop.f32.mrb[12].mxu0 }
 0x110   :  { %v619_v36 = vpop.f32.mrb[12].mxu1  ;;  %v214_v37 = vpop.f32.mrb[13].mxu0 }
 0x111   :  { %v407_v38 = vadd.f32 %v619_v36, %v782_v56  ;;  %v398_v39 = vpop.f32.mrb[13].mxu1  ;;  %v588_v40 = vpop.f32.mrb[14].mxu0 }
 0x112   :  { %v399_v41 = vadd.f32 %v782_v56, %v398_v39  ;;  %v516_v42 = vpack.c.bf16 %v588_v40, %v587_v35  ;;  %v620_v43 = vpop.f32.mrb[14].mxu1  ;;  %v217_v44 = vpop.f32.mrb[15].mxu0 }
 0x113   :  { %427 = vst [vmem:[%s876_s5 + $0x70] sm:$0xff] %v407_v38  ;;  %v410_v45 = vadd.f32 %v620_v43, %v782_v56  ;;  %v511_v46 = vpack.c.bf16 %v217_v44, %v214_v37  ;;  %v401_v47 = vpop.f32.mrb[15].mxu1 }
 0x114   :  { %425 = vst [vmem:[%s876_s5 + $0x60] sm:$0xff] %v399_v41  ;;  %524 = vst [vmem:[%s877_s4 + $0x38] sm:$0xff] %v516_v42   ;;  %v402_v48 = vadd.f32 %v782_v56, %v401_v47 }
 0x115   :  { %428 = vst [vmem:[%s876_s5 + $0x78] sm:$0xff] %v410_v45  ;;  %523 = vst [vmem:[%s877_s4 + $0x30] sm:$0xff] %v511_v46  }
 0x116   :  { %426 = vst [vmem:[%s876_s5 + $0x68] sm:$0xff] %v402_v48 }

// kernel: gnn_forward.5
= control target key start
LH: loop header
LB: loop body
LE: loop exit
PB: predicated region body
PF: predicated region fallthrough
CT: control target
= control target key end

     0   :  { %v691_v1 = vmov 0   ;;  %s893_s1 = inlined_call_operand.vmem [shape: bf16[128,128], index: 1, kind: input, shape index: {}]   ;;  %s894_s0 = inlined_call_operand.vmem [shape: s8[128,128], index: 0, kind: input, shape index: {}]   ;;  %s895_s3 = inlined_call_operand.vmem [shape: f32[128,1], index: 3, kind: input, shape index: {}]   ;;  %s896_s2 = inlined_call_operand.vmem [shape: f32[128,128], index: 2, kind: input, shape index: {}]   ;;  %s897_s4 = inlined_call_operand.vmem [shape: bf16[128,128], index: 4, kind: output, shape index: {}]  }
   0x1   :  { %v683_v0 = vld [vmem:[%s893_s1] sm:$0xff]   ;;  %682 = vset.pattern.permute.xlu1 %v691_v1  ;;  %681 = vset.pattern.permute.xlu0 %v691_v1  ;;  %v684_v2 = vld [vmem:[%s893_s1 + $0x8] sm:$0xff]   ;;  %v685_v3 = vld [vmem:[%s893_s1 + $0x10] sm:$0xff]  }
   0x2   :  { %632 = vmatprep.subr.bf16.mxu0 %v683_v0  ;;  %664 = vmatprep.subr.bf16.mxu1 %v683_v0  ;;  %v686_v4 = vld [vmem:[%s893_s1 + $0x18] sm:$0xff]   ;;  %v732_v5 = vld [vmem:[%s894_s0] sm:$0xff]  ;;  %v737_v6 = vld [vmem:[%s894_s0 + $0x10] sm:$0xff] }
   0x3   :  { %633 = vmatpush3.bf16.msra.mxu0 %v683_v0  ;;  %672 = vmatpush3.bf16.msra.mxu1 %v683_v0  ;;  %v42_v7 = vunpack.c.l.s8.bf16 %v732_v5  ;;  %v46_v8 = vunpack.c.l.s8.bf16 %v737_v6  ;;  %v285_v9 = vld [vmem:[%s895_s3 + $0x10] sm:$0xff]  ;;  %v283_v10 = vld [vmem:[%s895_s3] sm:$0xff]  ;;  %v286_v11 = vld [vmem:[%s895_s3 + $0x18] sm:$0xff]  ;;  %v43_v27 = vunpack.c.h.s8.bf16 %v732_v5  ;;  %v47_v28 = vunpack.c.h.s8.bf16 %v737_v6 }
   0x4   :  { %634 = vmatprep.subr.bf16.mxu0 %v684_v2  ;;  %665 = vmatprep.subr.bf16.mxu1 %v684_v2  ;;  %v284_v12 = vld [vmem:[%s895_s3 + $0x8] sm:$0xff]  ;;  %v687_v13 = vld [vmem:[%s893_s1 + $0x20] sm:$0xff]   ;;  %v290_v17 = vld [vmem:[%s895_s3 + $0x38] sm:$0xff] }
   0x5   :  { %311 = vperm.xlu1 %682, %v285_v9   ;;  %301 = vperm.xlu0 %681, %v283_v10   ;;  %v288_v14 = vld [vmem:[%s895_s3 + $0x28] sm:$0xff]  ;;  %v287_v15 = vld [vmem:[%s895_s3 + $0x20] sm:$0xff]  ;;  %v289_v18 = vld [vmem:[%s895_s3 + $0x30] sm:$0xff] }
   0x6   :  { %648 = vmatprep.mubr.bf16.mxu0 %v42_v7  ;;  %656 = vmatprep.mubr.bf16.mxu1 %v46_v8  ;;  %v688_v16 = vld [vmem:[%s893_s1 + $0x28] sm:$0xff]   ;;  %v689_v19 = vld [vmem:[%s893_s1 + $0x30] sm:$0xff]   ;;  %v291_v21 = vld [vmem:[%s895_s3 + $0x40] sm:$0xff] }
   0x7   :  { %635 = vmatpush3.bf16.msra.mxu0 %v684_v2  ;;  %673 = vmatpush3.bf16.msra.mxu1 %v684_v2  ;;  %v292_v20 = vld [vmem:[%s895_s3 + $0x48] sm:$0xff]  ;;  %v690_v22 = vld [vmem:[%s893_s1 + $0x38] sm:$0xff]   ;;  %v293_v24 = vld [vmem:[%s895_s3 + $0x50] sm:$0xff] }
   0x8   :  { %636 = vmatprep.subr.bf16.mxu0 %v685_v3  ;;  %666 = vmatprep.subr.bf16.mxu1 %v685_v3  ;;  %v294_v23 = vld [vmem:[%s895_s3 + $0x58] sm:$0xff]  ;;  %v39_v25 = vld [vmem:[%s894_s0 + $0x8] sm:$0xff]  ;;  %v295_v32 = vld [vmem:[%s895_s3 + $0x60] sm:$0xff] }
   0x9   :  { %316 = vperm.xlu1 %682, %v286_v11   ;;  %306 = vperm.xlu0 %681, %v284_v12   ;;  %v41_v26 = vld [vmem:[%s894_s0 + $0x18] sm:$0xff]  ;;  %v44_v29 = vunpack.c.l.s8.bf16 %v39_v25  ;;  %v296_v31 = vld [vmem:[%s895_s3 + $0x68] sm:$0xff]  ;;  %v297_v34 = vld [vmem:[%s895_s3 + $0x70] sm:$0xff]  ;;  %v45_v35 = vunpack.c.h.s8.bf16 %v39_v25 }
   0xa   :  { %v48_v30 = vunpack.c.l.s8.bf16 %v41_v26  ;;  %v298_v33 = vld [vmem:[%s895_s3 + $0x78] sm:$0xff]  ;;  %v49_v36 = vunpack.c.h.s8.bf16 %v41_v26  ;;  %v397_v52 = vld [vmem:[%s896_s2 + $0x10] sm:$0xff]  ;;  %v395_v58 = vld [vmem:[%s896_s2] sm:$0xff] }
   0xb   :  { %637 = vmatpush3.bf16.msra.mxu0 %v685_v3  ;;  %674 = vmatpush3.bf16.msra.mxu1 %v685_v3  ;;  %v405_v54 = vld [vmem:[%s896_s2 + $0x50] sm:$0xff]  ;;  %v403_v60 = vld [vmem:[%s896_s2 + $0x40] sm:$0xff]  ;;  %v398_v0 = vld [vmem:[%s896_s2 + $0x18] sm:$0xff] }
   0xc   :  { %638 = vmatprep.subr.bf16.mxu0 %v686_v4  ;;  %667 = vmatprep.subr.bf16.mxu1 %v686_v4  ;;  %v406_v2 = vld [vmem:[%s896_s2 + $0x58] sm:$0xff]  ;;  %v396_v8 = vld [vmem:[%s896_s2 + $0x8] sm:$0xff]  ;;  %v401_v25 = vld [vmem:[%s896_s2 + $0x30] sm:$0xff] }
   0xd   :  { %326 = vperm.xlu1 %682, %v288_v14   ;;  %321 = vperm.xlu0 %681, %v287_v15   ;;  %v404_v10 = vld [vmem:[%s896_s2 + $0x48] sm:$0xff]  ;;  %v409_v26 = vld [vmem:[%s896_s2 + $0x70] sm:$0xff] }
   0xf   :  { %639 = vmatpush3.bf16.msra.mxu0 %v686_v4  ;;  %675 = vmatpush3.bf16.msra.mxu1 %v686_v4 }
  0x10   :  { %640 = vmatprep.subr.bf16.mxu0 %v687_v13  ;;  %668 = vmatprep.subr.bf16.mxu1 %v687_v13 }
  0x11   :  { %336 = vperm.xlu1 %682, %v290_v17   ;;  %331 = vperm.xlu0 %681, %v289_v18  }
  0x13   :  { %641 = vmatpush3.bf16.msra.mxu0 %v687_v13  ;;  %676 = vmatpush3.bf16.msra.mxu1 %v687_v13 }
  0x14   :  { %642 = vmatprep.subr.bf16.mxu0 %v688_v16  ;;  %669 = vmatprep.subr.bf16.mxu1 %v688_v16 }
  0x15   :  { %346 = vperm.xlu1 %682, %v292_v20   ;;  %341 = vperm.xlu0 %681, %v291_v21  }
  0x17   :  { %643 = vmatpush3.bf16.msra.mxu0 %v688_v16  ;;  %677 = vmatpush3.bf16.msra.mxu1 %v688_v16 }
  0x18   :  { %644 = vmatprep.subr.bf16.mxu0 %v689_v19  ;;  %670 = vmatprep.subr.bf16.mxu1 %v689_v19 }
  0x19   :  { %356 = vperm.xlu1 %682, %v294_v23   ;;  %351 = vperm.xlu0 %681, %v293_v24  }
  0x1b   :  { %645 = vmatpush3.bf16.msra.mxu0 %v689_v19  ;;  %678 = vmatpush3.bf16.msra.mxu1 %v689_v19 }
  0x1c   :  { %646 = vmatprep.subr.bf16.mxu0 %v690_v22  ;;  %671 = vmatprep.subr.bf16.mxu1 %v690_v22 }
  0x1d   :  { %366 = vperm.xlu1 %682, %v296_v31   ;;  %361 = vperm.xlu0 %681, %v295_v32  }
  0x1f   :  { %647 = vmatpush3.bf16.msra.mxu0 %v690_v22  ;;  %679 = vmatpush3.bf16.msra.mxu1 %v690_v22 }
  0x21   :  { %376 = vperm.xlu1 %682, %v298_v33   ;;  %371 = vperm.xlu0 %681, %v297_v34  }
  0x22   :  { %649 = vmatmul.mubr.bf16.vlgmr.msra.gmra.mrb[0].mxu0 %v43_v27  ;;  %657 = vmatmul.mubr.bf16.vlgmr.msra.gmra.mrb[0].mxu1 %v47_v28 }
  0x23   :  { %652 = vmatprep.mubr.bf16.mxu0 %v44_v29  ;;  %660 = vmatprep.mubr.bf16.mxu1 %v48_v30 }
  0x2a   :  { %653 = vmatmul.mubr.bf16.gmra.mrb[4].mxu0 %v45_v35  ;;  %661 = vmatmul.mubr.bf16.gmra.mrb[4].mxu1 %v49_v36 }
  0x84   :  { %v312_v37 = vpop.permute.xlu1 %311  ;;  %v302_v38 = vpop.permute.xlu0 %301 }
  0x88   :  { %v317_v39 = vpop.permute.xlu1 %316  ;;  %v307_v40 = vpop.permute.xlu0 %306 }
  0x8c   :  { %v809_v41 = vpop.permute.xlu1 %326  ;;  %v811_v42 = vpop.permute.xlu0 %321 }
  0x90   :  { %v813_v43 = vpop.permute.xlu1 %336  ;;  %v332_v44 = vpop.permute.xlu0 %331 }
  0x94   :  { %v347_v45 = vpop.permute.xlu1 %346  ;;  %v342_v46 = vpop.permute.xlu0 %341 }
  0x98   :  { %v357_v47 = vpop.permute.xlu1 %356  ;;  %v352_v48 = vpop.permute.xlu0 %351 }
  0x9c   :  { %v815_v49 = vpop.permute.xlu1 %366  ;;  %v362_v50 = vpop.permute.xlu0 %361 }
  0xa0   :  { %v377_v19 = vpop.permute.xlu1 %376  ;;  %v372_v20 = vpop.permute.xlu0 %371 }
  0xf5   :  { %v650_v51 = vpop.f32.mrb[0].mxu0  ;;  %v658_v53 = vpop.f32.mrb[0].mxu1 }
  0xf6   :  { %v381_v55 = vmul.f32 %v650_v51, %v312_v37  ;;  %v389_v56 = vmul.f32 %v658_v53, %v352_v48  ;;  %v169_v57 = vpop.f32.mrb[1].mxu0  ;;  %v201_v59 = vpop.f32.mrb[1].mxu1  ;;  %v410_v53 = vld [vmem:[%s896_s2 + $0x78] sm:$0xff] }
  0xf7   :  { %v379_v61 = vmul.f32 %v302_v38, %v169_v57  ;;  %v387_v62 = vmul.f32 %v342_v46, %v201_v59  ;;  %v651_v63 = vpop.f32.mrb[2].mxu0  ;;  %v659_v1 = vpop.f32.mrb[2].mxu1  ;;  %v399_v38 = vld [vmem:[%s896_s2 + $0x20] sm:$0xff]  ;;  %v400_v57 = vld [vmem:[%s896_s2 + $0x28] sm:$0xff] }
  0xf8   :  { %v413_v3 = vadd.f32 %v397_v52, %v381_v55  ;;  %v421_v4 = vadd.f32 %v405_v54, %v389_v56  ;;  %v382_v5 = vmul.f32 %v651_v63, %v317_v39  ;;  %v390_v6 = vmul.f32 %v659_v1, %v357_v47  ;;  %v172_v7 = vpop.f32.mrb[3].mxu0  ;;  %v204_v9 = vpop.f32.mrb[3].mxu1  ;;  %v408_v59 = vld [vmem:[%s896_s2 + $0x68] sm:$0xff] }
  0xf9   :  { %v411_v11 = vadd.f32 %v395_v58, %v379_v61  ;;  %v419_v12 = vadd.f32 %v403_v60, %v387_v62  ;;  %v380_v13 = vmul.f32 %v307_v40, %v172_v7  ;;  %v388_v14 = vmul.f32 %v347_v45, %v204_v9  ;;  %v407_v40 = vld [vmem:[%s896_s2 + $0x60] sm:$0xff] }
  0xfa   :  { %v414_v15 = vadd.f32 %v398_v0, %v382_v5  ;;  %v422_v16 = vadd.f32 %v406_v2, %v390_v6  ;;  %v429_v21 = vmax.f32 %v413_v3, 0.0  ;;  %v437_v22 = vmax.f32 %v421_v4, 0.0 }
  0xfb   :  { %v412_v17 = vadd.f32 %v396_v8, %v380_v13  ;;  %v420_v18 = vadd.f32 %v404_v10, %v388_v14  ;;  %v427_v27 = vmax.f32 %v411_v11, 0.0  ;;  %v435_v28 = vmax.f32 %v419_v12, 0.0 }
  0xfc   :  { %v430_v23 = vmax.f32 %v414_v15, 0.0  ;;  %v438_v24 = vmax.f32 %v422_v16, 0.0 }
  0xfd   :  { %v428_v29 = vmax.f32 %v412_v17, 0.0  ;;  %v436_v30 = vmax.f32 %v420_v18, 0.0  ;;  %v654_v31 = vpop.f32.mrb[4].mxu0  ;;  %v662_v32 = vpop.f32.mrb[4].mxu1 }
  0xfe   :  { %v577_v33 = vpack.c.bf16 %v430_v23, %v429_v21  ;;  %v597_v34 = vpack.c.bf16 %v438_v24, %v437_v22  ;;  %v385_v35 = vmul.f32 %v654_v31, %v332_v44  ;;  %v393_v36 = vmul.f32 %v662_v32, %v372_v20  ;;  %v185_v37 = vpop.f32.mrb[5].mxu0  ;;  %v217_v39 = vpop.f32.mrb[5].mxu1  ;;  %v402_v44 = vld [vmem:[%s896_s2 + $0x38] sm:$0xff] }
  0xff   :  { %v572_v45 = vpack.c.bf16 %v428_v29, %v427_v27  ;;  %v592_v46 = vpack.c.bf16 %v436_v30, %v435_v28  ;;  %v383_v47 = vmul.f32 %v811_v42, %v185_v37  ;;  %v391_v48 = vmul.f32 %v362_v50, %v217_v39  ;;  %v655_v51 = vpop.f32.mrb[6].mxu0  ;;  %v663_v52 = vpop.f32.mrb[6].mxu1 }
 0x100   :  { %609 = vst [vmem:[%s897_s4 + $0x8] sm:$0xff] %v577_v33   ;;  %613 = vst [vmem:[%s897_s4 + $0x28] sm:$0xff] %v597_v34   ;;  %v417_v42 = vadd.f32 %v401_v25, %v385_v35  ;;  %v425_v50 = vadd.f32 %v409_v26, %v393_v36  ;;  %v386_v54 = vmul.f32 %v655_v51, %v813_v43  ;;  %v188_v56 = vpop.f32.mrb[7].mxu0  ;;  %v220_v58 = vpop.f32.mrb[7].mxu1 }
 0x101   :  { %v394_v55 = vmul.f32 %v663_v52, %v377_v19  ;;  %573 = vst [vmem:[%s897_s4] sm:$0xff] %v572_v45   ;;  %612 = vst [vmem:[%s897_s4 + $0x20] sm:$0xff] %v592_v46   ;;  %v415_v43 = vadd.f32 %v399_v38, %v383_v47  ;;  %v423_v60 = vadd.f32 %v407_v40, %v391_v48 }
 0x102   :  { %v384_v61 = vmul.f32 %v809_v41, %v188_v56  ;;  %v392_v62 = vmul.f32 %v815_v49, %v220_v58  ;;  %v418_v63 = vadd.f32 %v402_v44, %v386_v54  ;;  %v433_v3 = vmax.f32 %v417_v42, 0.0 }
 0x103   :  { %v426_v0 = vadd.f32 %v410_v53, %v394_v55  ;;  %v441_v4 = vmax.f32 %v425_v50, 0.0  ;;  %v431_v7 = vmax.f32 %v415_v43, 0.0  ;;  %v439_v8 = vmax.f32 %v423_v60, 0.0 }
 0x104   :  { %v416_v1 = vadd.f32 %v400_v57, %v384_v61  ;;  %v424_v2 = vadd.f32 %v408_v59, %v392_v62  ;;  %v434_v5 = vmax.f32 %v418_v63, 0.0 }
 0x105   :  { %v442_v6 = vmax.f32 %v426_v0, 0.0 }
 0x106   :  { %v432_v9 = vmax.f32 %v416_v1, 0.0  ;;  %v440_v10 = vmax.f32 %v424_v2, 0.0  ;;  %v587_v11 = vpack.c.bf16 %v434_v5, %v433_v3 }
 0x107   :  { %v607_v12 = vpack.c.bf16 %v442_v6, %v441_v4 }
 0x108   :  { %v582_v13 = vpack.c.bf16 %v432_v9, %v431_v7  ;;  %v602_v14 = vpack.c.bf16 %v440_v10, %v439_v8  ;;  %611 = vst [vmem:[%s897_s4 + $0x18] sm:$0xff] %v587_v11  }
 0x109   :  { %615 = vst [vmem:[%s897_s4 + $0x38] sm:$0xff] %v607_v12  }
 0x10a   :  { %610 = vst [vmem:[%s897_s4 + $0x10] sm:$0xff] %v582_v13   ;;  %614 = vst [vmem:[%s897_s4 + $0x30] sm:$0xff] %v602_v14  }

// kernel: gnn_forward.7
= control target key start
LH: loop header
LB: loop body
LE: loop exit
PB: predicated region body
PF: predicated region fallthrough
CT: control target
= control target key end

     0   :  { %v533_v1 = vmov 0   ;;  %s756_s1 = inlined_call_operand.vmem [shape: bf16[128,128], index: 1, kind: input, shape index: {}]   ;;  %s757_s0 = inlined_call_operand.vmem [shape: s8[128,128], index: 0, kind: input, shape index: {}]   ;;  %s758_s3 = inlined_call_operand.vmem [shape: f32[128,1], index: 3, kind: input, shape index: {}]   ;;  %s759_s2 = inlined_call_operand.vmem [shape: f32[128,128], index: 2, kind: input, shape index: {}]   ;;  %s760_s4 = inlined_call_operand.vmem [shape: f32[128,128], index: 4, kind: output, shape index: {}]  }
   0x1   :  { %v525_v0 = vld [vmem:[%s756_s1] sm:$0xff]   ;;  %524 = vset.pattern.permute.xlu1 %v533_v1  ;;  %523 = vset.pattern.permute.xlu0 %v533_v1  ;;  %v526_v2 = vld [vmem:[%s756_s1 + $0x8] sm:$0xff]   ;;  %v527_v3 = vld [vmem:[%s756_s1 + $0x10] sm:$0xff]  }
   0x2   :  { %473 = vmatprep.subr.bf16.mxu0 %v525_v0  ;;  %505 = vmatprep.subr.bf16.mxu1 %v525_v0  ;;  %v528_v4 = vld [vmem:[%s756_s1 + $0x18] sm:$0xff]   ;;  %v574_v5 = vld [vmem:[%s757_s0] sm:$0xff]  ;;  %v579_v6 = vld [vmem:[%s757_s0 + $0x10] sm:$0xff] }
   0x3   :  { %474 = vmatpush3.bf16.msra.mxu0 %v525_v0  ;;  %513 = vmatpush3.bf16.msra.mxu1 %v525_v0  ;;  %v42_v7 = vunpack.c.l.s8.bf16 %v574_v5  ;;  %v46_v8 = vunpack.c.l.s8.bf16 %v579_v6  ;;  %v285_v9 = vld [vmem:[%s758_s3 + $0x10] sm:$0xff]  ;;  %v283_v10 = vld [vmem:[%s758_s3] sm:$0xff]  ;;  %v286_v11 = vld [vmem:[%s758_s3 + $0x18] sm:$0xff]  ;;  %v43_v27 = vunpack.c.h.s8.bf16 %v574_v5  ;;  %v47_v28 = vunpack.c.h.s8.bf16 %v579_v6 }
   0x4   :  { %475 = vmatprep.subr.bf16.mxu0 %v526_v2  ;;  %506 = vmatprep.subr.bf16.mxu1 %v526_v2  ;;  %v284_v12 = vld [vmem:[%s758_s3 + $0x8] sm:$0xff]  ;;  %v529_v13 = vld [vmem:[%s756_s1 + $0x20] sm:$0xff]   ;;  %v290_v17 = vld [vmem:[%s758_s3 + $0x38] sm:$0xff] }
   0x5   :  { %311 = vperm.xlu1 %524, %v285_v9   ;;  %301 = vperm.xlu0 %523, %v283_v10   ;;  %v288_v14 = vld [vmem:[%s758_s3 + $0x28] sm:$0xff]  ;;  %v287_v15 = vld [vmem:[%s758_s3 + $0x20] sm:$0xff]  ;;  %v289_v18 = vld [vmem:[%s758_s3 + $0x30] sm:$0xff] }
   0x6   :  { %489 = vmatprep.mubr.bf16.mxu0 %v42_v7  ;;  %497 = vmatprep.mubr.bf16.mxu1 %v46_v8  ;;  %v530_v16 = vld [vmem:[%s756_s1 + $0x28] sm:$0xff]   ;;  %v531_v19 = vld [vmem:[%s756_s1 + $0x30] sm:$0xff]   ;;  %v291_v21 = vld [vmem:[%s758_s3 + $0x40] sm:$0xff] }
   0x7   :  { %476 = vmatpush3.bf16.msra.mxu0 %v526_v2  ;;  %514 = vmatpush3.bf16.msra.mxu1 %v526_v2  ;;  %v292_v20 = vld [vmem:[%s758_s3 + $0x48] sm:$0xff]  ;;  %v532_v22 = vld [vmem:[%s756_s1 + $0x38] sm:$0xff]   ;;  %v293_v24 = vld [vmem:[%s758_s3 + $0x50] sm:$0xff] }
   0x8   :  { %477 = vmatprep.subr.bf16.mxu0 %v527_v3  ;;  %507 = vmatprep.subr.bf16.mxu1 %v527_v3  ;;  %v294_v23 = vld [vmem:[%s758_s3 + $0x58] sm:$0xff]  ;;  %v39_v25 = vld [vmem:[%s757_s0 + $0x8] sm:$0xff]  ;;  %v295_v32 = vld [vmem:[%s758_s3 + $0x60] sm:$0xff] }
   0x9   :  { %316 = vperm.xlu1 %524, %v286_v11   ;;  %306 = vperm.xlu0 %523, %v284_v12   ;;  %v41_v26 = vld [vmem:[%s757_s0 + $0x18] sm:$0xff]  ;;  %v44_v29 = vunpack.c.l.s8.bf16 %v39_v25  ;;  %v296_v31 = vld [vmem:[%s758_s3 + $0x68] sm:$0xff]  ;;  %v297_v34 = vld [vmem:[%s758_s3 + $0x70] sm:$0xff]  ;;  %v45_v35 = vunpack.c.h.s8.bf16 %v39_v25 }
   0xa   :  { %v48_v30 = vunpack.c.l.s8.bf16 %v41_v26  ;;  %v298_v33 = vld [vmem:[%s758_s3 + $0x78] sm:$0xff]  ;;  %v49_v36 = vunpack.c.h.s8.bf16 %v41_v26  ;;  %v397_v54 = vld [vmem:[%s759_s2 + $0x10] sm:$0xff]  ;;  %v395_v60 = vld [vmem:[%s759_s2] sm:$0xff] }
   0xb   :  { %478 = vmatpush3.bf16.msra.mxu0 %v527_v3  ;;  %515 = vmatpush3.bf16.msra.mxu1 %v527_v3  ;;  %v405_v55 = vld [vmem:[%s759_s2 + $0x50] sm:$0xff]  ;;  %v403_v61 = vld [vmem:[%s759_s2 + $0x40] sm:$0xff]  ;;  %v398_v2 = vld [vmem:[%s759_s2 + $0x18] sm:$0xff] }
   0xc   :  { %479 = vmatprep.subr.bf16.mxu0 %v528_v4  ;;  %508 = vmatprep.subr.bf16.mxu1 %v528_v4  ;;  %v406_v3 = vld [vmem:[%s759_s2 + $0x58] sm:$0xff]  ;;  %v396_v8 = vld [vmem:[%s759_s2 + $0x8] sm:$0xff]  ;;  %v409_v25 = vld [vmem:[%s759_s2 + $0x70] sm:$0xff] }
   0xd   :  { %326 = vperm.xlu1 %524, %v288_v14   ;;  %321 = vperm.xlu0 %523, %v287_v15   ;;  %v404_v9 = vld [vmem:[%s759_s2 + $0x48] sm:$0xff] }
   0xf   :  { %480 = vmatpush3.bf16.msra.mxu0 %v528_v4  ;;  %516 = vmatpush3.bf16.msra.mxu1 %v528_v4 }
  0x10   :  { %481 = vmatprep.subr.bf16.mxu0 %v529_v13  ;;  %509 = vmatprep.subr.bf16.mxu1 %v529_v13 }
  0x11   :  { %336 = vperm.xlu1 %524, %v290_v17   ;;  %331 = vperm.xlu0 %523, %v289_v18  }
  0x13   :  { %482 = vmatpush3.bf16.msra.mxu0 %v529_v13  ;;  %517 = vmatpush3.bf16.msra.mxu1 %v529_v13 }
  0x14   :  { %483 = vmatprep.subr.bf16.mxu0 %v530_v16  ;;  %510 = vmatprep.subr.bf16.mxu1 %v530_v16 }
  0x15   :  { %346 = vperm.xlu1 %524, %v292_v20   ;;  %341 = vperm.xlu0 %523, %v291_v21  }
  0x17   :  { %484 = vmatpush3.bf16.msra.mxu0 %v530_v16  ;;  %518 = vmatpush3.bf16.msra.mxu1 %v530_v16 }
  0x18   :  { %485 = vmatprep.subr.bf16.mxu0 %v531_v19  ;;  %511 = vmatprep.subr.bf16.mxu1 %v531_v19 }
  0x19   :  { %356 = vperm.xlu1 %524, %v294_v23   ;;  %351 = vperm.xlu0 %523, %v293_v24   ;;  %v401_v24 = vld [vmem:[%s759_s2 + $0x30] sm:$0xff] }
  0x1b   :  { %486 = vmatpush3.bf16.msra.mxu0 %v531_v19  ;;  %519 = vmatpush3.bf16.msra.mxu1 %v531_v19 }
  0x1c   :  { %487 = vmatprep.subr.bf16.mxu0 %v532_v22  ;;  %512 = vmatprep.subr.bf16.mxu1 %v532_v22 }
  0x1d   :  { %366 = vperm.xlu1 %524, %v296_v31   ;;  %361 = vperm.xlu0 %523, %v295_v32   ;;  %v407_v31 = vld [vmem:[%s759_s2 + $0x60] sm:$0xff] }
  0x1f   :  { %488 = vmatpush3.bf16.msra.mxu0 %v532_v22  ;;  %520 = vmatpush3.bf16.msra.mxu1 %v532_v22 }
  0x21   :  { %376 = vperm.xlu1 %524, %v298_v33   ;;  %371 = vperm.xlu0 %523, %v297_v34  }
  0x22   :  { %490 = vmatmul.mubr.bf16.vlgmr.msra.gmra.mrb[0].mxu0 %v43_v27  ;;  %498 = vmatmul.mubr.bf16.vlgmr.msra.gmra.mrb[0].mxu1 %v47_v28 }
  0x23   :  { %493 = vmatprep.mubr.bf16.mxu0 %v44_v29  ;;  %501 = vmatprep.mubr.bf16.mxu1 %v48_v30  ;;  %v399_v30 = vld [vmem:[%s759_s2 + $0x20] sm:$0xff] }
  0x2a   :  { %494 = vmatmul.mubr.bf16.gmra.mrb[4].mxu0 %v45_v35  ;;  %502 = vmatmul.mubr.bf16.gmra.mrb[4].mxu1 %v49_v36 }
  0x84   :  { %v302_v37 = vpop.permute.xlu0 %301  ;;  %v312_v38 = vpop.permute.xlu1 %311 }
  0x88   :  { %v307_v39 = vpop.permute.xlu0 %306  ;;  %v317_v40 = vpop.permute.xlu1 %316 }
  0x8c   :  { %v651_v41 = vpop.permute.xlu0 %321  ;;  %v653_v42 = vpop.permute.xlu1 %326 }
  0x90   :  { %v332_v43 = vpop.permute.xlu0 %331  ;;  %v655_v44 = vpop.permute.xlu1 %336 }
  0x94   :  { %v342_v45 = vpop.permute.xlu0 %341  ;;  %v347_v46 = vpop.permute.xlu1 %346 }
  0x98   :  { %v352_v47 = vpop.permute.xlu0 %351  ;;  %v357_v48 = vpop.permute.xlu1 %356 }
  0x9c   :  { %v362_v49 = vpop.permute.xlu0 %361  ;;  %v367_v10 = vpop.permute.xlu1 %366 }
  0xa0   :  { %v372_v15 = vpop.permute.xlu0 %371  ;;  %v377_v34 = vpop.permute.xlu1 %376 }
  0xf5   :  { %v491_v50 = vpop.f32.mrb[0].mxu0  ;;  %v499_v51 = vpop.f32.mrb[0].mxu1 }
  0xf6   :  { %v169_v52 = vpop.f32.mrb[1].mxu0  ;;  %v201_v53 = vpop.f32.mrb[1].mxu1  ;;  %v381_v58 = vmul.f32 %v491_v50, %v312_v38  ;;  %v389_v59 = vmul.f32 %v499_v51, %v352_v47  ;;  %v410_v38 = vld [vmem:[%s759_s2 + $0x78] sm:$0xff] }
  0xf7   :  { %v492_v56 = vpop.f32.mrb[2].mxu0  ;;  %v500_v57 = vpop.f32.mrb[2].mxu1  ;;  %v379_v0 = vmul.f32 %v302_v37, %v169_v52  ;;  %v387_v1 = vmul.f32 %v342_v45, %v201_v53  ;;  %v402_v37 = vld [vmem:[%s759_s2 + $0x38] sm:$0xff] }
  0xf8   :  { %v172_v62 = vpop.f32.mrb[3].mxu0  ;;  %v204_v63 = vpop.f32.mrb[3].mxu1  ;;  %v413_v4 = vadd.f32 %v397_v54, %v381_v58  ;;  %v421_v5 = vadd.f32 %v405_v55, %v389_v59  ;;  %v382_v6 = vmul.f32 %v492_v56, %v317_v40  ;;  %v390_v7 = vmul.f32 %v500_v57, %v357_v48 }
  0xf9   :  { %v411_v11 = vadd.f32 %v395_v60, %v379_v0  ;;  %v419_v12 = vadd.f32 %v403_v61, %v387_v1  ;;  %v380_v13 = vmul.f32 %v307_v39, %v172_v62  ;;  %v388_v14 = vmul.f32 %v347_v46, %v204_v63  ;;  %v400_v46 = vld [vmem:[%s759_s2 + $0x28] sm:$0xff] }
  0xfa   :  { %429 = vst [vmem:[%s760_s4 + $0x10] sm:$0xff] %v413_v4  ;;  %437 = vst [vmem:[%s760_s4 + $0x50] sm:$0xff] %v421_v5  ;;  %v414_v16 = vadd.f32 %v398_v2, %v382_v6  ;;  %v422_v17 = vadd.f32 %v406_v3, %v390_v7 }
  0xfb   :  { %427 = vst [vmem:[%s760_s4] sm:$0xff] %v411_v11  ;;  %435 = vst [vmem:[%s760_s4 + $0x40] sm:$0xff] %v419_v12  ;;  %v412_v18 = vadd.f32 %v396_v8, %v380_v13  ;;  %v420_v19 = vadd.f32 %v404_v9, %v388_v14 }
  0xfc   :  { %430 = vst [vmem:[%s760_s4 + $0x18] sm:$0xff] %v414_v16  ;;  %438 = vst [vmem:[%s760_s4 + $0x58] sm:$0xff] %v422_v17 }
  0xfd   :  { %v495_v20 = vpop.f32.mrb[4].mxu0  ;;  %v503_v21 = vpop.f32.mrb[4].mxu1  ;;  %428 = vst [vmem:[%s760_s4 + $0x8] sm:$0xff] %v412_v18  ;;  %436 = vst [vmem:[%s760_s4 + $0x48] sm:$0xff] %v420_v19 }
  0xfe   :  { %v185_v22 = vpop.f32.mrb[5].mxu0  ;;  %v217_v23 = vpop.f32.mrb[5].mxu1  ;;  %v385_v28 = vmul.f32 %v495_v20, %v332_v43  ;;  %v393_v29 = vmul.f32 %v503_v21, %v372_v15 }
  0xff   :  { %v496_v26 = vpop.f32.mrb[6].mxu0  ;;  %v504_v27 = vpop.f32.mrb[6].mxu1  ;;  %v383_v35 = vmul.f32 %v651_v41, %v185_v22  ;;  %v391_v36 = vmul.f32 %v362_v49, %v217_v23  ;;  %v408_v41 = vld [vmem:[%s759_s2 + $0x68] sm:$0xff] }
 0x100   :  { %v188_v32 = vpop.f32.mrb[7].mxu0  ;;  %v220_v33 = vpop.f32.mrb[7].mxu1  ;;  %v417_v39 = vadd.f32 %v401_v24, %v385_v28  ;;  %v425_v40 = vadd.f32 %v409_v25, %v393_v29  ;;  %v386_v43 = vmul.f32 %v496_v26, %v655_v44  ;;  %v394_v45 = vmul.f32 %v504_v27, %v377_v34 }
 0x101   :  { %v415_v47 = vadd.f32 %v399_v30, %v383_v35  ;;  %v423_v48 = vadd.f32 %v407_v31, %v391_v36  ;;  %v384_v49 = vmul.f32 %v653_v42, %v188_v32  ;;  %v392_v50 = vmul.f32 %v367_v10, %v220_v33 }
 0x102   :  { %433 = vst [vmem:[%s760_s4 + $0x30] sm:$0xff] %v417_v39  ;;  %441 = vst [vmem:[%s760_s4 + $0x70] sm:$0xff] %v425_v40  ;;  %v418_v44 = vadd.f32 %v402_v37, %v386_v43  ;;  %v426_v51 = vadd.f32 %v410_v38, %v394_v45 }
 0x103   :  { %431 = vst [vmem:[%s760_s4 + $0x20] sm:$0xff] %v415_v47  ;;  %439 = vst [vmem:[%s760_s4 + $0x60] sm:$0xff] %v423_v48  ;;  %v416_v42 = vadd.f32 %v400_v46, %v384_v49  ;;  %v424_v52 = vadd.f32 %v408_v41, %v392_v50 }
 0x104   :  { %434 = vst [vmem:[%s760_s4 + $0x38] sm:$0xff] %v418_v44  ;;  %442 = vst [vmem:[%s760_s4 + $0x78] sm:$0xff] %v426_v51 }
 0x105   :  { %432 = vst [vmem:[%s760_s4 + $0x28] sm:$0xff] %v416_v42  ;;  %440 = vst [vmem:[%s760_s4 + $0x68] sm:$0xff] %v424_v52 }

</bundles_post_ra>
